<compile_context>
chip_gen: v7x
topology: tpu7x:2x2x1
jax: 0.10.0
libtpu: 0.0.40
codegen_flags: <defaults>
</compile_context>

<pallas_src>
import functools

import jax
import jax.numpy as jnp
from jax.experimental import pallas as pl
from jax.experimental.pallas import tpu as pltpu


def struc2vec_kernel(xv_ref, ws_ref,
                     w1a_ref, b1a_ref, w1b_ref, b1b_ref,
                     w2_ref, b2_ref, w3_ref, b3_ref,
                     w4_ref, b4_ref,
                     mu_ref, *, T):
    f32 = jnp.float32
    TB, N, D = xv_ref.shape
    Ep = w1a_ref.shape[1]          # lane-padded embedding width (multiple of 128)
    TBN = TB * N

    x = xv_ref[...]                # (TB, N, D)
    W = ws_ref[...]                # (TB, N, N) adjacency / connection weights

    # ---- s1 = theta1b(relu(theta1a(xv))): one (TB*N, D) @ (D, Ep) pass ------
    xf = x.reshape(TBN, D)
    h = jnp.maximum(
        jnp.dot(xf, w1a_ref[...], preferred_element_type=f32) + b1a_ref[...],
        0.0)
    s1 = jnp.dot(h, w1b_ref[...], preferred_element_type=f32) + b1b_ref[...]

    # ---- s3 = theta3(sum_i relu(theta4(W[:, i, j]))) ------------------------
    # Broadcast + sublane reduction replaces the old selector matmul: rows are
    # (graph, target-node j), the reduced source-node index i is on sublanes.
    Wt = jnp.swapaxes(W, 1, 2).reshape(TBN, N)                    # rows=(b, j)
    s3_1 = jnp.maximum(Wt[:, :, None] * w4_ref[...] + b4_ref[...], 0.0)  # (TBN, N, Ep)
    s3_2 = jnp.sum(s3_1, axis=1)                                  # (TBN, Ep)
    s3 = jnp.dot(s3_2, w3_ref[...], preferred_element_type=f32) + b3_ref[...]

    s13 = s1 + s3                  # loop-invariant

    # ---- message passing: mu <- relu(s1 + theta2(W @ mu) + s3) --------------
    if T <= 0:
        mu = jnp.zeros((TBN, Ep), f32)
    else:
        # t = 0 peeled: W @ 0 == 0, so theta2 contributes only its bias.
        mu = jnp.maximum(s13 + b2_ref[...], 0.0)

        def body(_, mu):
            agg = jnp.einsum('bij,bje->bie', W, mu.reshape(TB, N, Ep),
                             preferred_element_type=f32).reshape(TBN, Ep)
            s2 = jnp.dot(agg, w2_ref[...], preferred_element_type=f32) + b2_ref[...]
            # TODO(synk): for MXU-bound sizes, cast W/mu to bf16 here (keep
            # preferred_element_type=f32) for 2-4x matmul throughput.
            return jnp.maximum(s13 + s2, 0.0)

        if T > 1:
            mu = jax.lax.fori_loop(1, T, body, mu, unroll=True)

    mu_ref[...] = mu.reshape(TB, N, Ep)    # lane-dense (Ep multiple of 128)


def _choose_graphs_per_block(B, N):
    """Largest divisor of B that keeps blocks modest and, when possible,
    leaves >= 2 grid steps so both v7x TensorCores get work."""
    best = 1
    for tb in range(1, B + 1):
        if B % tb or tb * N > 512:
            continue
        if B // tb >= 2:
            best = tb
    return best


def struc2vec_forward(xv, Ws, params, T, graphs_per_block=None):
    B, N, D = xv.shape
    E = params["w1a"].shape[1]
    Ep = ((E + 127) // 128) * 128          # pad embedding to full lane width

    TB = graphs_per_block or _choose_graphs_per_block(B, N)
    assert B % TB == 0, (B, TB)

    # Zero-pad weights/biases to Ep; padded channels stay exactly zero through
    # every relu/linear, so slicing [..., :E] at the end is exact.
    def pad_out(a):                         # pad output features (last dim)
        return jnp.pad(a, [(0, 0)] * (a.ndim - 1) + [(0, Ep - a.shape[-1])])

    def pad_in_out(a):                      # pad (E, E) weights to (Ep, Ep)
        return jnp.pad(a, [(0, Ep - a.shape[0]), (0, Ep - a.shape[1])])

    w1a, b1a = pad_out(params["w1a"]), pad_out(params["b1a"])
    w1b, b1b = pad_in_out(params["w1b"]), pad_out(params["b1b"])
    w2, b2 = pad_in_out(params["w2"]), pad_out(params["b2"])
    w3, b3 = pad_in_out(params["w3"]), pad_out(params["b3"])
    w4, b4 = pad_out(params["w4"]), pad_out(params["b4"])

    kernel = functools.partial(struc2vec_kernel, T=T)

    def param_spec(shape):
        return pl.BlockSpec(shape, lambda b: (0,) * len(shape))

    in_specs = [
        pl.BlockSpec((TB, N, D), lambda b: (b, 0, 0)),   # xv
        pl.BlockSpec((TB, N, N), lambda b: (b, 0, 0)),   # Ws
        param_spec((D, Ep)), param_spec((1, Ep)),        # theta1a
        param_spec((Ep, Ep)), param_spec((1, Ep)),       # theta1b
        param_spec((Ep, Ep)), param_spec((1, Ep)),       # theta2
        param_spec((Ep, Ep)), param_spec((1, Ep)),       # theta3
        param_spec((1, Ep)), param_spec((1, Ep)),        # theta4
    ]

    mu_padded = pl.pallas_call(
        kernel,
        out_shape=jax.ShapeDtypeStruct((B, N, Ep), jnp.float32),
        grid=(B // TB,),
        in_specs=in_specs,
        out_specs=pl.BlockSpec((TB, N, Ep), lambda b: (b, 0, 0)),
        compiler_params=pltpu.CompilerParams(
            dimension_semantics=("parallel",)),
    )(xv, Ws, w1a, b1a, w1b, b1b, w2, b2, w3, b3, w4, b4)

    return mu_padded[..., :E]


def struc2vec_reference(xv, Ws, params, T):
    """Pure-JAX reference mirroring the PyTorch forward."""
    def lin(x, w, b):
        return x @ w + b  # b is (1, E), broadcasts

    s1 = lin(jax.nn.relu(lin(xv, params["w1a"], params["b1a"])),
             params["w1b"], params["b1b"])
    s3_1 = jax.nn.relu(Ws[..., None] * params["w4"][0] + params["b4"][0])  # (B,N,N,E)
    s3_2 = s3_1.sum(axis=1)
    s3 = lin(s3_2, params["w3"], params["b3"])

    mu = jnp.zeros_like(s1)
    for _ in range(T):
        s2 = lin(Ws @ mu, params["w2"], params["b2"])
        mu = jax.nn.relu(s1 + s2 + s3)
    return mu


if __name__ == "__main__":
    B, N, node_dim, emb_dim, T = 8, 16, 4, 32, 3

    key = jax.random.PRNGKey(0)
    keys = jax.random.split(key, 12)

    def init(k, shape, scale=0.1):
        return (scale * jax.random.normal(k, shape)).astype(jnp.float32)

    params = {
        "w1a": init(keys[0], (node_dim, emb_dim)), "b1a": init(keys[1], (1, emb_dim)),
        "w1b": init(keys[2], (emb_dim, emb_dim)),  "b1b": init(keys[3], (1, emb_dim)),
        "w2":  init(keys[4], (emb_dim, emb_dim)),  "b2":  init(keys[5], (1, emb_dim)),
        "w3":  init(keys[6], (emb_dim, emb_dim)),  "b3":  init(keys[7], (1, emb_dim)),
        "w4":  init(keys[8], (1, emb_dim)),        "b4":  init(keys[9], (1, emb_dim)),
    }

    xv = jax.random.normal(keys[10], (B, N, node_dim), dtype=jnp.float32)
    Ws = jax.random.uniform(keys[11], (B, N, N), dtype=jnp.float32)

    mu = struc2vec_forward(xv, Ws, params, T)
    mu = jax.block_until_ready(mu)

    ref = struc2vec_reference(xv, Ws, params, T)
    assert mu.shape == (B, N, emb_dim)
    assert jnp.all(jnp.isfinite(mu))
    assert jnp.allclose(mu, ref, rtol=2e-2, atol=2e-2), "mismatch vs JAX reference"

    print("KERNEL_OK")
</pallas_src>

<mosaic_0001>
module attributes {stable_mosaic.version = 11 : i64} {
  func.func @struc2vec_kernel(%arg0: i32, %arg1: memref<4x16x4xf32, #tpu.memory_space<vmem>>, %arg2: memref<4x16x16xf32, #tpu.memory_space<vmem>>, %arg3: memref<4x128xf32, #tpu.memory_space<vmem>>, %arg4: memref<1x128xf32, #tpu.memory_space<vmem>>, %arg5: memref<128x128xf32, #tpu.memory_space<vmem>>, %arg6: memref<1x128xf32, #tpu.memory_space<vmem>>, %arg7: memref<128x128xf32, #tpu.memory_space<vmem>>, %arg8: memref<1x128xf32, #tpu.memory_space<vmem>>, %arg9: memref<128x128xf32, #tpu.memory_space<vmem>>, %arg10: memref<1x128xf32, #tpu.memory_space<vmem>>, %arg11: memref<1x128xf32, #tpu.memory_space<vmem>>, %arg12: memref<1x128xf32, #tpu.memory_space<vmem>>, %arg13: memref<4x16x128xf32, #tpu.memory_space<vmem>>) attributes {dimension_semantics = [#tpu.dimension_semantics<parallel>], iteration_bounds = array<i64: 2>, scalar_prefetch = 0 : i64, scratch_operands = 0 : i64, tpu.core_type = #tpu.core_type<tc>, window_params = [{transform_indices = @transform_0, window_bounds = array<i64: 4, 16, 4>}, {transform_indices = @transform_1, window_bounds = array<i64: 4, 16, 16>}, {pipeline_mode = #tpu.pipeline_mode<synchronous>, transform_indices = @transform_2, window_bounds = array<i64: 4, 128>}, {pipeline_mode = #tpu.pipeline_mode<synchronous>, transform_indices = @transform_3, window_bounds = array<i64: 1, 128>}, {pipeline_mode = #tpu.pipeline_mode<synchronous>, transform_indices = @transform_4, window_bounds = array<i64: 128, 128>}, {pipeline_mode = #tpu.pipeline_mode<synchronous>, transform_indices = @transform_5, window_bounds = array<i64: 1, 128>}, {pipeline_mode = #tpu.pipeline_mode<synchronous>, transform_indices = @transform_6, window_bounds = array<i64: 128, 128>}, {pipeline_mode = #tpu.pipeline_mode<synchronous>, transform_indices = @transform_7, window_bounds = array<i64: 1, 128>}, {pipeline_mode = #tpu.pipeline_mode<synchronous>, transform_indices = @transform_8, window_bounds = array<i64: 128, 128>}, {pipeline_mode = #tpu.pipeline_mode<synchronous>, transform_indices = @transform_9, window_bounds = array<i64: 1, 128>}, {pipeline_mode = #tpu.pipeline_mode<synchronous>, transform_indices = @transform_10, window_bounds = array<i64: 1, 128>}, {pipeline_mode = #tpu.pipeline_mode<synchronous>, transform_indices = @transform_11, window_bounds = array<i64: 1, 128>}, {transform_indices = @transform_12, window_bounds = array<i64: 4, 16, 128>}]} {
    %c0 = arith.constant 0 : index
    %c0_0 = arith.constant 0 : index
    %c0_1 = arith.constant 0 : index
    %0 = vector.load %arg1[%c0, %c0_0, %c0_1] : memref<4x16x4xf32, #tpu.memory_space<vmem>>, vector<4x16x4xf32>
    %c0_2 = arith.constant 0 : index
    %c0_3 = arith.constant 0 : index
    %c0_4 = arith.constant 0 : index
    %1 = vector.load %arg2[%c0_2, %c0_3, %c0_4] : memref<4x16x16xf32, #tpu.memory_space<vmem>>, vector<4x16x16xf32>
    %2 = vector.shape_cast %0 : vector<4x16x4xf32> to vector<64x4xf32>
    %c0_5 = arith.constant 0 : index
    %c0_6 = arith.constant 0 : index
    %3 = vector.load %arg3[%c0_5, %c0_6] : memref<4x128xf32, #tpu.memory_space<vmem>>, vector<4x128xf32>
    %cst = arith.constant dense<0.000000e+00> : vector<64x128xf32>
    %4 = tpu.matmul %2, %3, %cst {dimension_numbers = #tpu.dot_dimension_numbers<[1], [0], [0], [1], [0, 0, 1, 1], [], []>} : vector<64x4xf32>, vector<4x128xf32>, vector<64x128xf32> -> vector<64x128xf32>
    %c0_7 = arith.constant 0 : index
    %c0_8 = arith.constant 0 : index
    %5 = vector.load %arg4[%c0_7, %c0_8] : memref<1x128xf32, #tpu.memory_space<vmem>>, vector<1x128xf32>
    %6 = vector.broadcast %5 : vector<1x128xf32> to vector<64x128xf32>
    %7 = arith.addf %4, %6 : vector<64x128xf32>
    %cst_9 = arith.constant 0.000000e+00 : f32
    %8 = vector.broadcast %cst_9 : f32 to vector<64x128xf32>
    %9 = arith.maximumf %7, %8 : vector<64x128xf32>
    %c0_10 = arith.constant 0 : index
    %c0_11 = arith.constant 0 : index
    %10 = vector.load %arg5[%c0_10, %c0_11] : memref<128x128xf32, #tpu.memory_space<vmem>>, vector<128x128xf32>
    %cst_12 = arith.constant dense<0.000000e+00> : vector<64x128xf32>
    %11 = tpu.matmul %9, %10, %cst_12 {dimension_numbers = #tpu.dot_dimension_numbers<[1], [0], [0], [1], [0, 0, 1, 1], [], []>} : vector<64x128xf32>, vector<128x128xf32>, vector<64x128xf32> -> vector<64x128xf32>
    %c0_13 = arith.constant 0 : index
    %c0_14 = arith.constant 0 : index
    %12 = vector.load %arg6[%c0_13, %c0_14] : memref<1x128xf32, #tpu.memory_space<vmem>>, vector<1x128xf32>
    %13 = vector.broadcast %12 : vector<1x128xf32> to vector<64x128xf32>
    %14 = arith.addf %11, %13 : vector<64x128xf32>
    %15 = tpu.transpose %1, [0, 2, 1] : vector<4x16x16xf32> -> vector<4x16x16xf32>
    %16 = vector.shape_cast %15 : vector<4x16x16xf32> to vector<64x16xf32>
    %17 = vector.shape_cast %16 : vector<64x16xf32> to vector<64x16x1xf32>
    %c0_15 = arith.constant 0 : index
    %c0_16 = arith.constant 0 : index
    %18 = vector.load %arg11[%c0_15, %c0_16] : memref<1x128xf32, #tpu.memory_space<vmem>>, vector<1x128xf32>
    %19 = vector.shape_cast %18 : vector<1x128xf32> to vector<1x1x128xf32>
    %20 = vector.broadcast %17 : vector<64x16x1xf32> to vector<64x16x128xf32>
    %21 = vector.broadcast %19 : vector<1x1x128xf32> to vector<64x16x128xf32>
    %22 = arith.mulf %20, %21 : vector<64x16x128xf32>
    %c0_17 = arith.constant 0 : index
    %c0_18 = arith.constant 0 : index
    %23 = vector.load %arg12[%c0_17, %c0_18] : memref<1x128xf32, #tpu.memory_space<vmem>>, vector<1x128xf32>
    %24 = vector.shape_cast %23 : vector<1x128xf32> to vector<1x1x128xf32>
    %25 = vector.broadcast %24 : vector<1x1x128xf32> to vector<64x16x128xf32>
    %26 = arith.addf %22, %25 : vector<64x16x128xf32>
    %cst_19 = arith.constant 0.000000e+00 : f32
    %27 = vector.broadcast %cst_19 : f32 to vector<64x16x128xf32>
    %28 = arith.maximumf %26, %27 : vector<64x16x128xf32>
    %cst_20 = arith.constant dense<0.000000e+00> : vector<64x128xf32>
    %29 = vector.multi_reduction <add>, %28, %cst_20 [1] : vector<64x16x128xf32> to vector<64x128xf32>
    %c0_21 = arith.constant 0 : index
    %c0_22 = arith.constant 0 : index
    %30 = vector.load %arg9[%c0_21, %c0_22] : memref<128x128xf32, #tpu.memory_space<vmem>>, vector<128x128xf32>
    %cst_23 = arith.constant dense<0.000000e+00> : vector<64x128xf32>
    %31 = tpu.matmul %29, %30, %cst_23 {dimension_numbers = #tpu.dot_dimension_numbers<[1], [0], [0], [1], [0, 0, 1, 1], [], []>} : vector<64x128xf32>, vector<128x128xf32>, vector<64x128xf32> -> vector<64x128xf32>
    %c0_24 = arith.constant 0 : index
    %c0_25 = arith.constant 0 : index
    %32 = vector.load %arg10[%c0_24, %c0_25] : memref<1x128xf32, #tpu.memory_space<vmem>>, vector<1x128xf32>
    %33 = vector.broadcast %32 : vector<1x128xf32> to vector<64x128xf32>
    %34 = arith.addf %31, %33 : vector<64x128xf32>
    %35 = arith.addf %14, %34 : vector<64x128xf32>
    %c0_26 = arith.constant 0 : index
    %c0_27 = arith.constant 0 : index
    %36 = vector.load %arg8[%c0_26, %c0_27] : memref<1x128xf32, #tpu.memory_space<vmem>>, vector<1x128xf32>
    %37 = vector.broadcast %36 : vector<1x128xf32> to vector<64x128xf32>
    %38 = arith.addf %35, %37 : vector<64x128xf32>
    %cst_28 = arith.constant 0.000000e+00 : f32
    %39 = vector.broadcast %cst_28 : f32 to vector<64x128xf32>
    %40 = arith.maximumf %38, %39 : vector<64x128xf32>
    %c0_i32 = arith.constant 0 : i32
    %41 = vector.shape_cast %40 : vector<64x128xf32> to vector<4x16x128xf32>
    "tpu.trace_start"() <{level = 10 : i32, message = "bij,bje->bie"}> : () -> ()
    %cst_29 = arith.constant dense<0.000000e+00> : vector<4x16x128xf32>
    %42 = tpu.matmul %1, %41, %cst_29 {dimension_numbers = #tpu.dot_dimension_numbers<[2], [1], [1], [2], [0, 0, 0, 1, 1, 2], [0], [0]>} : vector<4x16x16xf32>, vector<4x16x128xf32>, vector<4x16x128xf32> -> vector<4x16x128xf32>
    "tpu.trace_stop"() : () -> ()
    %43 = vector.shape_cast %42 : vector<4x16x128xf32> to vector<64x128xf32>
    %c0_30 = arith.constant 0 : index
    %c0_31 = arith.constant 0 : index
    %44 = vector.load %arg7[%c0_30, %c0_31] : memref<128x128xf32, #tpu.memory_space<vmem>>, vector<128x128xf32>
    %cst_32 = arith.constant dense<0.000000e+00> : vector<64x128xf32>
    %45 = tpu.matmul %43, %44, %cst_32 {dimension_numbers = #tpu.dot_dimension_numbers<[1], [0], [0], [1], [0, 0, 1, 1], [], []>} : vector<64x128xf32>, vector<128x128xf32>, vector<64x128xf32> -> vector<64x128xf32>
    %c0_33 = arith.constant 0 : index
    %c0_34 = arith.constant 0 : index
    %46 = vector.load %arg8[%c0_33, %c0_34] : memref<1x128xf32, #tpu.memory_space<vmem>>, vector<1x128xf32>
    %47 = vector.broadcast %46 : vector<1x128xf32> to vector<64x128xf32>
    %48 = arith.addf %45, %47 : vector<64x128xf32>
    %49 = arith.addf %35, %48 : vector<64x128xf32>
    %cst_35 = arith.constant 0.000000e+00 : f32
    %50 = vector.broadcast %cst_35 : f32 to vector<64x128xf32>
    %51 = arith.maximumf %49, %50 : vector<64x128xf32>
    %c1_i32 = arith.constant 1 : i32
    %52 = vector.shape_cast %51 : vector<64x128xf32> to vector<4x16x128xf32>
    "tpu.trace_start"() <{level = 10 : i32, message = "bij,bje->bie"}> : () -> ()
    %cst_36 = arith.constant dense<0.000000e+00> : vector<4x16x128xf32>
    %53 = tpu.matmul %1, %52, %cst_36 {dimension_numbers = #tpu.dot_dimension_numbers<[2], [1], [1], [2], [0, 0, 0, 1, 1, 2], [0], [0]>} : vector<4x16x16xf32>, vector<4x16x128xf32>, vector<4x16x128xf32> -> vector<4x16x128xf32>
    "tpu.trace_stop"() : () -> ()
    %54 = vector.shape_cast %53 : vector<4x16x128xf32> to vector<64x128xf32>
    %c0_37 = arith.constant 0 : index
    %c0_38 = arith.constant 0 : index
    %55 = vector.load %arg7[%c0_37, %c0_38] : memref<128x128xf32, #tpu.memory_space<vmem>>, vector<128x128xf32>
    %cst_39 = arith.constant dense<0.000000e+00> : vector<64x128xf32>
    %56 = tpu.matmul %54, %55, %cst_39 {dimension_numbers = #tpu.dot_dimension_numbers<[1], [0], [0], [1], [0, 0, 1, 1], [], []>} : vector<64x128xf32>, vector<128x128xf32>, vector<64x128xf32> -> vector<64x128xf32>
    %c0_40 = arith.constant 0 : index
    %c0_41 = arith.constant 0 : index
    %57 = vector.load %arg8[%c0_40, %c0_41] : memref<1x128xf32, #tpu.memory_space<vmem>>, vector<1x128xf32>
    %58 = vector.broadcast %57 : vector<1x128xf32> to vector<64x128xf32>
    %59 = arith.addf %56, %58 : vector<64x128xf32>
    %60 = arith.addf %35, %59 : vector<64x128xf32>
    %cst_42 = arith.constant 0.000000e+00 : f32
    %61 = vector.broadcast %cst_42 : f32 to vector<64x128xf32>
    %62 = arith.maximumf %60, %61 : vector<64x128xf32>
    %63 = vector.shape_cast %62 : vector<64x128xf32> to vector<4x16x128xf32>
    %c0_43 = arith.constant 0 : index
    %c0_44 = arith.constant 0 : index
    %c0_45 = arith.constant 0 : index
    %64 = vector.load %arg13[%c0_43, %c0_44, %c0_45] : memref<4x16x128xf32, #tpu.memory_space<vmem>>, vector<4x16x128xf32>
    tpu.vector_store %arg13[%c0_43, %c0_44, %c0_45], %63 {strides = array<i32>} : memref<4x16x128xf32, #tpu.memory_space<vmem>>, vector<4x16x128xf32>,
    return
  }
  func.func @transform_0(%arg0: i32) -> (i32, i32, i32) {
    %c0_i32 = arith.constant 0 : i32
    %c0_i32_0 = arith.constant 0 : i32
    %c0_i32_1 = arith.constant 0 : i32
    return %arg0, %c0_i32, %c0_i32_0 : i32, i32, i32
  }
  func.func @transform_1(%arg0: i32) -> (i32, i32, i32) {
    %c0_i32 = arith.constant 0 : i32
    %c0_i32_0 = arith.constant 0 : i32
    %c0_i32_1 = arith.constant 0 : i32
    return %arg0, %c0_i32, %c0_i32_0 : i32, i32, i32
  }
  func.func @transform_2(%arg0: i32) -> (i32, i32) {
    %c0_i32 = arith.constant 0 : i32
    %c0_i32_0 = arith.constant 0 : i32
    %c0_i32_1 = arith.constant 0 : i32
    return %c0_i32, %c0_i32_0 : i32, i32
  }
  func.func @transform_3(%arg0: i32) -> (i32, i32) {
    %c0_i32 = arith.constant 0 : i32
    %c0_i32_0 = arith.constant 0 : i32
    %c0_i32_1 = arith.constant 0 : i32
    return %c0_i32, %c0_i32_0 : i32, i32
  }
  func.func @transform_4(%arg0: i32) -> (i32, i32) {
    %c0_i32 = arith.constant 0 : i32
    %c0_i32_0 = arith.constant 0 : i32
    %c0_i32_1 = arith.constant 0 : i32
    return %c0_i32, %c0_i32_0 : i32, i32
  }
  func.func @transform_5(%arg0: i32) -> (i32, i32) {
    %c0_i32 = arith.constant 0 : i32
    %c0_i32_0 = arith.constant 0 : i32
    %c0_i32_1 = arith.constant 0 : i32
    return %c0_i32, %c0_i32_0 : i32, i32
  }
  func.func @transform_6(%arg0: i32) -> (i32, i32) {
    %c0_i32 = arith.constant 0 : i32
    %c0_i32_0 = arith.constant 0 : i32
    %c0_i32_1 = arith.constant 0 : i32
    return %c0_i32, %c0_i32_0 : i32, i32
  }
  func.func @transform_7(%arg0: i32) -> (i32, i32) {
    %c0_i32 = arith.constant 0 : i32
    %c0_i32_0 = arith.constant 0 : i32
    %c0_i32_1 = arith.constant 0 : i32
    return %c0_i32, %c0_i32_0 : i32, i32
  }
  func.func @transform_8(%arg0: i32) -> (i32, i32) {
    %c0_i32 = arith.constant 0 : i32
    %c0_i32_0 = arith.constant 0 : i32
    %c0_i32_1 = arith.constant 0 : i32
    return %c0_i32, %c0_i32_0 : i32, i32
  }
  func.func @transform_9(%arg0: i32) -> (i32, i32) {
    %c0_i32 = arith.constant 0 : i32
    %c0_i32_0 = arith.constant 0 : i32
    %c0_i32_1 = arith.constant 0 : i32
    return %c0_i32, %c0_i32_0 : i32, i32
  }
  func.func @transform_10(%arg0: i32) -> (i32, i32) {
    %c0_i32 = arith.constant 0 : i32
    %c0_i32_0 = arith.constant 0 : i32
    %c0_i32_1 = arith.constant 0 : i32
    return %c0_i32, %c0_i32_0 : i32, i32
  }
  func.func @transform_11(%arg0: i32) -> (i32, i32) {
    %c0_i32 = arith.constant 0 : i32
    %c0_i32_0 = arith.constant 0 : i32
    %c0_i32_1 = arith.constant 0 : i32
    return %c0_i32, %c0_i32_0 : i32, i32
  }
  func.func @transform_12(%arg0: i32) -> (i32, i32, i32) {
    %c0_i32 = arith.constant 0 : i32
    %c0_i32_0 = arith.constant 0 : i32
    %c0_i32_1 = arith.constant 0 : i32
    return %arg0, %c0_i32, %c0_i32_0 : i32, i32, i32
  }
}

</mosaic_0001>

<bundles_post_ra>
// kernel: tpu_custom_call.1
= control target key start
LH: loop header
LB: loop body
LE: loop exit
PB: predicated region body
PF: predicated region fallthrough
CT: control target
= control target key end

     0   :  { %s5889_s0 = inlined_call_operand.vmem [shape: f32[8,16,4], index: 0, kind: input, shape index: {}]   ;;  %s5890_s1 = inlined_call_operand.vmem [shape: f32[8,16,16], index: 1, kind: input, shape index: {}]   ;;  %s5891_s2 = inlined_call_operand.vmem [shape: f32[4,128], index: 2, kind: input, shape index: {}]   ;;  %s5892_s3 = inlined_call_operand.vmem [shape: f32[1,128], index: 3, kind: input, shape index: {}]   ;;  %s5893_s4 = inlined_call_operand.hbm [shape: f32[128,128], index: 4, kind: input, shape index: {}]   ;;  %s5894_s5 = inlined_call_operand.vmem [shape: f32[1,128], index: 5, kind: input, shape index: {}]   ;;  %s5895_s6 = inlined_call_operand.hbm [shape: f32[128,128], index: 6, kind: input, shape index: {}]   ;;  %s5896_s7 = inlined_call_operand.vmem [shape: f32[1,128], index: 7, kind: input, shape index: {}]   ;;  %s5897_s8 = inlined_call_operand.hbm [shape: f32[128,128], index: 8, kind: input, shape index: {}]   ;;  %s5898_s9 = inlined_call_operand.vmem [shape: f32[1,128], index: 9, kind: input, shape index: {}]   ;;  %s5899_s10 = inlined_call_operand.vmem [shape: f32[1,128], index: 10, kind: input, shape index: {}]   ;;  %s5900_s11 = inlined_call_operand.vmem [shape: f32[1,128], index: 11, kind: input, shape index: {}]   ;;  %s5901_s12 = inlined_call_operand.hbm [shape: f32[8,16,128], index: 12, kind: output, shape index: {}]  }
   0x1   :  { %5914 = sst [smem:[#allocation19_spill]] %s5901_s12 }
   0x2   :  { %17 = vsyncpa [#allocation3], 0 }
   0x3   :  { %18 = vsyncpa [#allocation6], 0 }
   0x4   :  { %19 = vsyncpa [#allocation4], 0 }
   0x5   :  { %21 = vsyncpa [#allocation4 + $0x1], 0  ;;  %s4737_s21 = smov 0   ;;  %s4739_s22 = smov 0  }
   0x6   :  { %s4741_s23 = smov 0   ;;  %s4743_s24 = smov 0  }
   0x7 LB: > { %5915 = sst [smem:[#allocation12_spill]] %s4650_s21  ;;  %s4758_s25 = sadd.s32 4294967295, %s4662_s24   ;;  %s4662_s24 = sphi %s4743_s24, %s5940_s24   ;;  %s4658_s23 = sphi %s4741_s23, %s5942_s23   ;;  %s4654_s22 = sphi %s4739_s22, %s5944_s22   ;;  %s4650_s21 = sphi %s4737_s21, %s5943_s21  }
   0x8   : > { %5916 = sst [smem:[#allocation13_spill]] %s4658_s23  ;;  %s3794_s26 = sadd.s32 4294967294, %s4662_s24  }
   0x9   : > { %5917 = sst [smem:[#allocation14_spill]] %s4662_s24  ;;  %s4762_s27 = sadd.s32 1, %s4662_s24  }
   0xa   : > { %5918 = sst [smem:[#allocation15_spill]] %s4762_s27  ;;  %s296_s28 = sadd.s32 1, %s4658_s23 }
   0xb   : > { %s293_s29 = ssub.s32 %s4662_s24, %s4762_s27  ;;  %p306_p0 = scmp.ne.s32.totalorder %s4658_s23, %s4654_s22 }
   0xc   : > { %p294_p1 = scmp.eq.s32.totalorder %s293_s29, 0  ;;  %p307_p2 = scmp.eq.s32.totalorder %s4758_s25, 1 }
   0xd   : > { %p312_p3 = scmp.ne.s32.totalorder %s4654_s22, %s4650_s21  ;;  %p313_p4 = scmp.eq.s32.totalorder %s3794_s26, 1 }
   0xe   : > { %s4773_s30 = scalar_select %p294_p1, %s4658_s23, %s296_s28  }
   0xf   : > { %p4775_p5 = por %p307_p2, %p306_p0  ;;  %p4779_p6 = por %p313_p4, %p312_p3 }
  0x10   : > { %5919 = sst [smem:[#allocation16_spill]] %s4773_s30  ;;  %p3795_p7 = scmp.ge.s32.totalorder %s4662_s24, 1 }
  0x11   : > { %s5920_s13 = scalar_select %p4775_p5, 1, 0 }
  0x12   : > { %s5922_s14 = scalar_select %p4779_p6, 1, 0 }
  0x13   : > { %5921 = sst [smem:[#allocation17_spill]] %s5920_s13  ;;  %p320_p8 = scmp.lt.s32.totalorder %s4662_s24, 3 }
  0x14   : > { %5923 = sst [smem:[#allocation18_spill]] %s5922_s14  ;;  %p5906_p9 = scmp.eq.s32.totalorder %s4758_s25, 0 }
  0x15   : > { %p4786_p10 = pnand %p3795_p7, %p320_p8  ;;  %s4664_s16 = smov [#allocation5]  }
  0x16   : > { %s354_s17 = sshll.u32 %s4664_s16, 4  ;;  %s4665_s19 = smov [#allocation2]   ;;  %s4792_s17 = int_to_ptr.vmem [resolvable:$true] %s354_s17 }
  0x17   : > { %s5924_s15 = scalar_select %p4786_p10, 1, 0 }
  0x18   : > { %p4435_p11 = pneg %p4786_p10  ;;  %s338_s20 = sshll.u32 %s4665_s19, 4  ;;  %s4800_s20 = int_to_ptr.vmem [resolvable:$true] %s338_s20 }
  0x19   : > { %s4666_s26 = smov [#allocation7]   ;;  %s4508_s23 = scalar_lea.hbm %s5895_s6, 2048 }
  0x1a   : > { %p4796_p12 = pnand %p5906_p9, %p4435_p11  ;;  %s4802_s28 = sshll.u32 %s4666_s26, 4  ;;  %s371_s28 = int_to_ptr.vmem [resolvable:$true] %s4802_s28 }
  0x1b   : > { %p4509_p13 = scmp.ne.s32.totalorder %s5895_s6, %s4508_s23  ;;  %p4515_p3 = scmp.lt.u32.totalorder %s4508_s23, %s5895_s6 }
  0x1c   : > { %p4812_p0 = pneg %p4796_p12 }
  0x1e   : > { %p4511_p1 = pnand %p4812_p0, %p4509_p13 }
  0x20   : > { %p4512_p2 = pneg %p4511_p1 }
  0x22   : > { %p4517_p4 = pnand %p4515_p3, %p4512_p2 }
  0x24   : > { %4520 = shalt.err (!%p4517_p4)
}
  0x25   : > { %s4521_s27 = scalar_lea.vmem %s4792_s17, 2048  ;;  %p4529_p9 = scmp.lt.s32.totalorder %s4792_s17, %s4792_s17 }
  0x26   : > { %p4522_p7 = scmp.ne.s32.totalorder %s4792_s17, %s4521_s27  ;;  %p4530_p6 = scmp.lt.s32.totalorder %s4521_s27, %s4521_s27 }
  0x28   : > { %p4524_p8 = pnand %p4522_p7, %p4812_p0  ;;  %p4531_p13 = por %p4530_p6, %p4529_p9 }
  0x2a   : > { %p4525_p11 = pneg %p4524_p8 }
  0x2c   : > { %p4532_p1 = pnand %p4531_p13, %p4525_p11 }
  0x2e   : > { %4535 = shalt.err (!%p4532_p1)
}
  0x2f   : > { %s4667_s30 = smov 128   ;;  %s4668_s23 = smov 8  }
  0x30   : > { %4441 = dma.hbm_to_vmem [thread:$0]  (!%p4796_p12), %s5895_s6, 2048, %s4792_s17, [#allocation6], %s4667_s30, %s4667_s30, %s4668_s23  }
  0x31   : > { %s4536_s27 = scalar_lea.hbm %s5893_s4, 2048 }
  0x32   : > { %p4537_p6 = scmp.ne.s32.totalorder %s5893_s4, %s4536_s27  ;;  %p4543_p3 = scmp.lt.u32.totalorder %s4536_s27, %s5893_s4 }
  0x34   : > { %p4539_p9 = pnand %p4537_p6, %p4812_p0 }
  0x36   : > { %p4540_p2 = pneg %p4539_p9 }
  0x38   : > { %p4545_p4 = pnand %p4543_p3, %p4540_p2 }
  0x3a   : > { %4548 = shalt.err (!%p4545_p4)
}
  0x3b   : > { %s4549_s17 = scalar_lea.vmem %s4800_s20, 2048  ;;  %p4557_p13 = scmp.lt.s32.totalorder %s4800_s20, %s4800_s20 }
  0x3c   : > { %p4550_p7 = scmp.ne.s32.totalorder %s4800_s20, %s4549_s17  ;;  %p4558_p1 = scmp.lt.s32.totalorder %s4549_s17, %s4549_s17 }
  0x3e   : > { %p4552_p8 = pnand %p4550_p7, %p4812_p0  ;;  %p4559_p6 = por %p4558_p1, %p4557_p13 }
  0x40   : > { %p4553_p11 = pneg %p4552_p8 }
  0x42   : > { %p4560_p9 = pnand %p4559_p6, %p4553_p11 }
  0x44   : > { %4563 = shalt.err (!%p4560_p9)
}
  0x45   : > { %4438 = dma.hbm_to_vmem [thread:$0]  (!%p4796_p12), %s5893_s4, 2048, %s4800_s20, [#allocation3], %s4667_s30, %s4667_s30, %s4668_s23  }
  0x46   : > { %s4564_s29 = scalar_lea.hbm %s5897_s8, 2048 }
  0x47   : > { %p4565_p2 = scmp.ne.s32.totalorder %s5897_s8, %s4564_s29  ;;  %p4571_p7 = scmp.lt.u32.totalorder %s4564_s29, %s5897_s8 }
  0x49   : > { %p4567_p3 = pnand %p4565_p2, %p4812_p0 }
  0x4b   : > { %p4568_p4 = pneg %p4567_p3 }
  0x4d   : > { %p4573_p8 = pnand %p4571_p7, %p4568_p4 }
  0x4f   : > { %4576 = shalt.err (!%p4573_p8)
}
  0x50   : > { %s4577_s17 = scalar_lea.vmem %s371_s28, 2048  ;;  %p4585_p6 = scmp.lt.s32.totalorder %s371_s28, %s371_s28 }
  0x51   : > { %p4578_p11 = scmp.ne.s32.totalorder %s371_s28, %s4577_s17  ;;  %p4586_p9 = scmp.lt.s32.totalorder %s4577_s17, %s4577_s17 }
  0x53   : > { %p4580_p13 = pnand %p4578_p11, %p4812_p0  ;;  %p4587_p5 = por %p4586_p9, %p4585_p6 }
  0x55   : > { %p4581_p1 = pneg %p4580_p13 }
  0x57   : > { %p4588_p10 = pnand %p4587_p5, %p4581_p1 }
  0x59   : > { %4591 = shalt.err (!%p4588_p10)
}
  0x5a   : > { %4444 = dma.hbm_to_vmem [thread:$0]  (!%p4796_p12), %s5897_s8, 2048, %s371_s28, [#allocation6], %s4667_s30, %s4667_s30, %s4668_s23  }
  0x5b   : > { %p5927_p2 = scmp.ne.s32.totalorder %s5924_s15, 0 }
  0x5c   : > { %p5928_p0 = scmp.eq.s32.totalorder (!%p5927_p2), %s4758_s25, 0 }
  0x5d   : > { %415 = sbr.rel (%p5927_p2) target bundleno = 1746 (0x6d2), region = 68 }
  0x64   : > { %4637 = dma.done.wait (%p5928_p0), [#allocation3], 2048   ;;  %p5929_p3 = pmov %p5928_p0 }
  0x65   : > { %p5930_p5 = pmov %p5928_p0 }
  0x66   : > { %4639 = vsyncadd (%p5929_p3), [#allocation3], 4294965248 }
  0x67   : > { %4641 = dma.done.wait (%p5930_p5), [#allocation6], 4096   ;;  %p5931_p10 = pmov %p5928_p0 }
  0x68   : > { %s3805_s14 = sshll.u32 %s4758_s25, 2  ;;  %vm536_vm0 = vcmask 1043456   ;;  %vm511_vm1 = vcmask 31744   ;;  %v503_v3 = vld [vmem:[%s5891_s2] sm:$0xf]  ;;  %v909_v17 = vlaneseq  ;;  %v654_v34 = vld [vmem:[#allocation2 + $0x8] sm:$0xff] }
  0x69   : > { %4643 = vsyncadd (%p5931_p10), [#allocation6], 4294963200  ;;  %p473_p4 = scmp.lt.s32.totalorder %s3805_s14, 7  ;;  %3991 = vmatprep.subr.msk.mxu1 %vm536_vm0, %v503_v3  ;;  %v653_v33 = vld [vmem:[#allocation2] sm:$0xff]  ;;  %v655_v37 = vld [vmem:[#allocation2 + $0x10] sm:$0xff]  ;;  %vm2546_vm2 = vcmask 1041409  }
  0x6a   : > { %3992 = vmatpush3.msk.msra.mxu1 %vm536_vm0, %v503_v3  ;;  %v4932_v18 = vshrl.u32 %v909_v17, 7  ;;  %v4237_v35 = vpack.c.bf16 %v654_v34, %v653_v33  ;;  %v656_v38 = vld [vmem:[#allocation2 + $0x18] sm:$0xff]  ;;  %v657_v41 = vld [vmem:[#allocation2 + $0x20] sm:$0xff]  ;;  %v658_v42 = vld [vmem:[#allocation2 + $0x28] sm:$0xff]  ;;  %vm2548_vm3 = vcmask 1042434   ;;  %vm2550_vm4 = vcmask 1043459  }
  0x6b   : > { %s5946_s14 = smov (!%p473_p4, %s3805_s14), 7  ;;  %v4241_v39 = vpack.c.bf16 %v656_v38, %v655_v37  ;;  %v4245_v43 = vpack.c.bf16 %v658_v42, %v657_v41  ;;  %v659_v45 = vld [vmem:[#allocation2 + $0x30] sm:$0xff]  ;;  %v660_v46 = vld [vmem:[#allocation2 + $0x38] sm:$0xff]  ;;  %v661_v49 = vld [vmem:[#allocation2 + $0x40] sm:$0xff]  ;;  %vm2552_vm5 = vcmask 1044484   ;;  %vm2554_vm6 = vcmask 1045509  }
  0x6c   : > { %s3850_s18 = sshll.u32 %s5946_s14, 4  ;;  %v4935_v19 = vsub.s32 0, %v4932_v18  ;;  %v4942_v22 = vsub.s32 1, %v4932_v18  ;;  %v4945_v23 = vsub.s32 2, %v4932_v18  ;;  %v4952_v26 = vsub.s32 3, %v4932_v18  ;;  %4238 = vmatprep.subr.bf16.mxu1 %v4237_v35  ;;  %v662_v50 = vld [vmem:[#allocation2 + $0x48] sm:$0xff] }
  0x6d   : > { %s4898_s30 = scalar_lea.vmem %s5890_s1, %s3850_s18  ;;  %s4903_s24 = scalar_lea.vmem %s5889_s0, %s3850_s18  ;;  %v4957_v28 = vsub.s32 4, %v4932_v18  ;;  %v4962_v30 = vsub.s32 5, %v4932_v18  ;;  %v4249_v47 = vpack.c.bf16 %v660_v46, %v659_v45  ;;  %v4253_v51 = vpack.c.bf16 %v662_v50, %v661_v49  ;;  %v663_v54 = vld [vmem:[#allocation2 + $0x50] sm:$0xff]  ;;  %v664_v55 = vld [vmem:[#allocation2 + $0x58] sm:$0xff]  ;;  %v665_v58 = vld [vmem:[#allocation2 + $0x60] sm:$0xff] }
  0x6e   : > { %v495_v0 = vld [vmem:[%s4898_s30] sm:$0xff]  ;;  %v497_v1 = vld [vmem:[%s4898_s30 + $0x10] sm:$0xff]  ;;  %v496_v2 = vld [vmem:[%s4898_s30 + $0x8] sm:$0xff]  ;;  %v4979_v53 = vsub.s32 6, %v4932_v18  ;;  %v4257_v56 = vpack.c.bf16 %v664_v55, %v663_v54  ;;  %v4986_v62 = vsub.s32 7, %v4932_v18  ;;  %vm2556_vm7 = vcmask 1046534  }
  0x6f   : > { %781 = vxpose.xlu0.b32.start [1/2] (short) (narrow) %v495_v0, 16  ;;  %813 = vxpose.xlu1.b32.start [1/2] (short) (narrow) %v497_v1, 16  ;;  %v498_v4 = vld [vmem:[%s4898_s30 + $0x18] sm:$0xff]  ;;  %v487_v5 = vld [vmem:[%s4903_s24] sm:$0xff]  ;;  %v488_v6 = vld [vmem:[%s4903_s24 + $0x8] sm:$0xff]  ;;  %vm2558_vm8 = vcmask 1047559  }
  0x70   : > { %3993 = vmatprep.mubr.msk.f32.mxu1 %vm511_vm1, %v487_v5  ;;  %v489_v7 = vld [vmem:[%s4903_s24 + $0x10] sm:$0xff]  ;;  %v490_v8 = vld [vmem:[%s4903_s24 + $0x18] sm:$0xff]  ;;  %v499_v9 = vld [vmem:[%s4898_s30 + $0x20] sm:$0xff]  ;;  %vm2753_vm9 = vcmask 130048   ;;  %s5932_s12 = sld [smem:[#allocation17_spill]]  ;;  %s3853_s18 = sshll.u32 %s4758_s25, 10 }
  0x71   : > { %3994 = vmatmul.mubr.msk.f32.vlgmr.msra.gmra.mrb[0].mxu1 %vm511_vm1, %v488_v6  ;;  %v501_v10 = vld [vmem:[%s4898_s30 + $0x30] sm:$0xff]  ;;  %v491_v11 = vld [vmem:[%s4903_s24 + $0x20] sm:$0xff]  ;;  %v492_v12 = vld [vmem:[%s4903_s24 + $0x28] sm:$0xff]  ;;  %s5933_s23 = sld [smem:[#allocation19_spill]]  ;;  %s4669_s29 = smov [#allocation8]  }
  0x72   : > { %3996 = vmatprep.mubr.msk.f32.mxu1 %vm511_vm1, %v489_v7  ;;  %v500_v13 = vld [vmem:[%s4898_s30 + $0x28] sm:$0xff]  ;;  %v502_v14 = vld [vmem:[%s4898_s30 + $0x38] sm:$0xff]  ;;  %v493_v15 = vld [vmem:[%s4903_s24 + $0x30] sm:$0xff]  ;;  %4240 = vmatpush3.bf16.msra.mxu1 %v4237_v35  ;;  %s4596_s16 = sshll.u32 %s4669_s29, 4  ;;  %s4597_s16 = int_to_ptr.vmem [resolvable:$false] %s4596_s16 }
  0x73   : > { %782 = vxpose.xlu0.b32.end [2/2] (short) (narrow) %v496_v2, 16  ;;  %814 = vxpose.xlu1.b32.end [2/2] (short) (narrow) %v498_v4, 16  ;;  %v494_v16 = vld [vmem:[%s4903_s24 + $0x38] sm:$0xff]  ;;  %v666_v59 = vld [vmem:[#allocation2 + $0x68] sm:$0xff]  ;;  %v667_v63 = vld [vmem:[#allocation2 + $0x70] sm:$0xff]  ;;  %s4598_s19 = scalar_lea.vmem %s4597_s16, 2048 }
  0x74   : > { %4242 = vmatprep.subr.bf16.mxu1 %v4241_v39  ;;  %v4261_v60 = vpack.c.bf16 %v666_v59, %v665_v58  ;;  %v668_v0 = vld [vmem:[#allocation2 + $0x78] sm:$0xff]  ;;  %v2459_v3 = vld [vmem:[#allocation7] sm:$0xff]  ;;  %v2460_v4 = vld [vmem:[#allocation7 + $0x8] sm:$0xff] }
  0x75   : > { %3997 = vmatmul.mubr.msk.f32.gmra.mrb[2].mxu1 %vm511_vm1, %v490_v8  ;;  %v4265_v1 = vpack.c.bf16 %v668_v0, %v667_v63  ;;  %v4269_v5 = vpack.c.bf16 %v2460_v4, %v2459_v3  ;;  %v2464_v41 = vld [vmem:[#allocation7 + $0x28] sm:$0xff]  ;;  %v2465_v50 = vld [vmem:[#allocation7 + $0x30] sm:$0xff]  ;;  %v2467_v63 = vld [vmem:[#allocation7 + $0x40] sm:$0xff] }
  0x76   : > { %3999 = vmatprep.mubr.msk.f32.mxu1 %vm511_vm1, %v491_v11  ;;  %4244 = vmatpush3.bf16.msra.mxu1 %v4241_v39  ;;  %v2468_v0 = vld [vmem:[#allocation7 + $0x48] sm:$0xff]  ;;  %p5935_p7 = scmp.ne.s32.totalorder %s5932_s12, 0 }
  0x77   : > { %845 = vxpose.xlu0.b32.start [1/2] (short) (narrow) %v499_v9, 16  ;;  %877 = vxpose.xlu1.b32.start [1/2] (short) (narrow) %v501_v10, 16  ;;  %v4285_v3 = vpack.c.bf16 %v2468_v0, %v2467_v63  ;;  %s5934_s13 = smov %s5933_s23  ;;  %s5842_s21 = scalar_lea.hbm %s5933_s23, %s3853_s18 }
  0x78   : > { %4246 = vmatprep.subr.bf16.mxu1 %v4245_v43 }
  0x79   : > { %4000 = vmatmul.mubr.msk.f32.gmra.mrb[4].mxu1 %vm511_vm1, %v492_v12 }
  0x7a   : > { %4002 = vmatprep.mubr.msk.f32.mxu1 %vm511_vm1, %v493_v15  ;;  %4248 = vmatpush3.bf16.msra.mxu1 %v4245_v43 }
  0x7b   : > { %846 = vxpose.xlu0.b32.end [2/2] (short) (narrow) %v500_v13, 16  ;;  %878 = vxpose.xlu1.b32.end [2/2] (short) (narrow) %v502_v14, 16 }
  0x7c   : > { %4250 = vmatprep.subr.bf16.mxu1 %v4249_v47 }
  0x7d   : > { %4003 = vmatmul.mubr.msk.f32.gmra.mrb[6].mxu1 %vm511_vm1, %v494_v16  ;;  %v3811_v16 = vld [vmem:[%s5892_s3] ss:$0 sm:$0xff] }
  0x7e   : > { %4252 = vmatpush3.bf16.msra.mxu1 %v4249_v47 }
  0x7f   : > { %4254 = vmatprep.subr.bf16.mxu1 %v4253_v51 }
  0x82   : > { %4256 = vmatpush3.bf16.msra.mxu1 %v4253_v51  ;;  %v2466_v51 = vld [vmem:[#allocation7 + $0x38] sm:$0xff] }
  0x83   : > { %4258 = vmatprep.subr.bf16.mxu1 %v4257_v56  ;;  %v4281_v59 = vpack.c.bf16 %v2466_v51, %v2465_v50 }
  0x86   : > { %4260 = vmatpush3.bf16.msra.mxu1 %v4257_v56 }
  0x87   : > { %4262 = vmatprep.subr.bf16.mxu1 %v4261_v60 }
  0x8a   : > { %4264 = vmatpush3.bf16.msra.mxu1 %v4261_v60 }
  0x8b   : > { %4266 = vmatprep.subr.bf16.mxu1 %v4265_v1 }
  0x8e   : > { %4268 = vmatpush3.bf16.msra.mxu1 %v4265_v1 }
  0x8f   : > { %4270 = vmatprep.subr.bf16.mxu1 %v4269_v5 }
  0xef   : > { %v4937_v20 = vpop.trf.xlu0  ;;  %v4990_v6 = vpop.trf.xlu1 }
  0xf0   : > { %v912_v21 = vrot.slane %v4937_v20, %v4935_v19  ;;  %v923_v24 = vrot.slane %v4937_v20, %v4942_v22  ;;  %v934_v25 = vrot.slane %v4937_v20, %v4945_v23  ;;  %v945_v27 = vrot.slane %v4937_v20, %v4952_v26 }
  0xf1   : > { %v956_v29 = vrot.slane %v4937_v20, %v4957_v28  ;;  %v967_v32 = vrot.slane %v4937_v20, %v4962_v30  ;;  %v978_v57 = vrot.slane %v4937_v20, %v4979_v53  ;;  %v989_v2 = vrot.slane %v4937_v20, %v4986_v62 }
  0xf2   : > { %918 = vbcast.lane.b32.xlu1 %v912_v21, 264  ;;  %914 = vbcast.lane.b32.xlu0 %v912_v21, 256  ;;  %v1088_v8 = vrot.slane %v4990_v6, %v4935_v19  ;;  %v1099_v9 = vrot.slane %v4990_v6, %v4942_v22  ;;  %v1110_v12 = vrot.slane %v4990_v6, %v4945_v23 }
  0xf3   : > { %v4964_v31 = vpop.trf.xlu0  ;;  %v5000_v11 = vpop.trf.xlu1  ;;  %v1121_v15 = vrot.slane %v4990_v6, %v4952_v26 }
  0xf4   : > { %v1000_v36 = vrot.slane %v4964_v31, %v4935_v19  ;;  %v1011_v40 = vrot.slane %v4964_v31, %v4942_v22  ;;  %v1022_v44 = vrot.slane %v4964_v31, %v4945_v23  ;;  %v1033_v48 = vrot.slane %v4964_v31, %v4952_v26 }
  0xf5   : > { %v1044_v52 = vrot.slane %v4964_v31, %v4957_v28  ;;  %v1055_v61 = vrot.slane %v4964_v31, %v4962_v30  ;;  %v1066_v7 = vrot.slane %v4964_v31, %v4979_v53  ;;  %v1077_v10 = vrot.slane %v4964_v31, %v4986_v62  ;;  %v2462_v31 = vld [vmem:[#allocation7 + $0x18] sm:$0xff] }
  0xf6   : > { %925 = vbcast.lane.b32.xlu1 %v923_v24, 256  ;;  %940 = vbcast.lane.b32.xlu0 %v934_v25, 264  ;;  %v1176_v13 = vrot.slane %v5000_v11, %v4935_v19  ;;  %v1187_v14 = vrot.slane %v5000_v11, %v4942_v22  ;;  %v1198_v17 = vrot.slane %v5000_v11, %v4945_v23 }
  0xf7   : > { %v1209_v38 = vrot.slane %v5000_v11, %v4952_v26  ;;  %v1220_v60 = vrot.slane %v5000_v11, %v4957_v28  ;;  %v5027_v4 = vpop.trf.xlu1 }
  0xfa   : > { %929 = vbcast.lane.b32.xlu1 %v923_v24, 264  ;;  %951 = vbcast.lane.b32.xlu0 %v945_v27, 264 }
  0xfe   : > { %936 = vbcast.lane.b32.xlu1 %v934_v25, 256  ;;  %962 = vbcast.lane.b32.xlu0 %v956_v29, 264  ;;  %v1132_v25 = vrot.slane %v4990_v6, %v4957_v28 }
 0x102   : > { %947 = vbcast.lane.b32.xlu1 %v945_v27, 256  ;;  %973 = vbcast.lane.b32.xlu0 %v967_v32, 264 }
 0x106   : > { %958 = vbcast.lane.b32.xlu1 %v956_v29, 256  ;;  %1006 = vbcast.lane.b32.xlu0 %v1000_v36, 264  ;;  %v2461_v29 = vld [vmem:[#allocation7 + $0x10] sm:$0xff] }
 0x107   : > { %v4273_v37 = vpack.c.bf16 %v2462_v31, %v2461_v29 }
 0x10a   : > { %969 = vbcast.lane.b32.xlu1 %v967_v32, 256  ;;  %1017 = vbcast.lane.b32.xlu0 %v1011_v40, 264 }
 0x10e   : > { %1028 = vbcast.lane.b32.xlu0 %v1022_v44, 264  ;;  %1002 = vbcast.lane.b32.xlu1 %v1000_v36, 256 }
 0x112   : > { %1039 = vbcast.lane.b32.xlu0 %v1033_v48, 264  ;;  %1013 = vbcast.lane.b32.xlu1 %v1011_v40, 256  ;;  %v2463_v40 = vld [vmem:[#allocation7 + $0x20] sm:$0xff] }
 0x113   : > { %v4277_v47 = vpack.c.bf16 %v2464_v41, %v2463_v40  ;;  %v5055_v40 = vld [vmem:[%s5900_s11] ss:$0 sm:$0xff] }
 0x116   : > { %1050 = vbcast.lane.b32.xlu0 %v1044_v52, 264  ;;  %1024 = vbcast.lane.b32.xlu1 %v1022_v44, 256 }
 0x11a   : > { %984 = vbcast.lane.b32.xlu0 %v978_v57, 264  ;;  %1035 = vbcast.lane.b32.xlu1 %v1033_v48, 256  ;;  %v1143_v48 = vrot.slane %v4990_v6, %v4962_v30 }
 0x11e   : > { %1061 = vbcast.lane.b32.xlu0 %v1055_v61, 264  ;;  %1046 = vbcast.lane.b32.xlu1 %v1044_v52, 256 }
 0x122   : > { %995 = vbcast.lane.b32.xlu0 %v989_v2, 264  ;;  %980 = vbcast.lane.b32.xlu1 %v978_v57, 256  ;;  %v5021_v57 = vpop.trf.xlu0 }
 0x123   : > { %v1286_v31 = vrot.slane %v5021_v57, %v4945_v23 }
 0x126   : > { %1072 = vbcast.lane.b32.xlu0 %v1066_v7, 264  ;;  %1057 = vbcast.lane.b32.xlu1 %v1055_v61, 256 }
 0x12a   : > { %1094 = vbcast.lane.b32.xlu0 %v1088_v8, 264  ;;  %991 = vbcast.lane.b32.xlu1 %v989_v2, 256  ;;  %v1264_v2 = vrot.slane %v5021_v57, %v4935_v19 }
 0x12e   : > { %1105 = vbcast.lane.b32.xlu0 %v1099_v9, 264  ;;  %1068 = vbcast.lane.b32.xlu1 %v1066_v7, 256  ;;  %v2470_v7 = vld [vmem:[#allocation7 + $0x58] sm:$0xff] }
 0x132   : > { %1083 = vbcast.lane.b32.xlu0 %v1077_v10, 264  ;;  %1090 = vbcast.lane.b32.xlu1 %v1088_v8, 256  ;;  %v1275_v8 = vrot.slane %v5021_v57, %v4942_v22 }
 0x136   : > { %1116 = vbcast.lane.b32.xlu0 %v1110_v12, 264  ;;  %1101 = vbcast.lane.b32.xlu1 %v1099_v9, 256 }
 0x13a   : > { %1182 = vbcast.lane.b32.xlu0 %v1176_v13, 264  ;;  %1079 = vbcast.lane.b32.xlu1 %v1077_v10, 256  ;;  %v2471_v10 = vld [vmem:[#allocation7 + $0x60] sm:$0xff] }
 0x13e   : > { %1193 = vbcast.lane.b32.xlu0 %v1187_v14, 264  ;;  %1112 = vbcast.lane.b32.xlu1 %v1110_v12, 256  ;;  %v2472_v12 = vld [vmem:[#allocation7 + $0x68] sm:$0xff] }
 0x142   : > { %1127 = vbcast.lane.b32.xlu0 %v1121_v15, 264  ;;  %1178 = vbcast.lane.b32.xlu1 %v1176_v13, 256  ;;  %v5031_v13 = vpop.trf.xlu1 }
 0x144   : > { %v3995_v18 = vpop.f32.mrb[0].mxu1 }
 0x145   : > { %v612_v20 = vadd.f32 %v3995_v18, %v3811_v16  ;;  %v606_v21 = vpop.f32.mrb[1].mxu1  ;;  %v2474_v18 = vld [vmem:[#allocation7 + $0x78] sm:$0xff] }
 0x146   : > { %1204 = vbcast.lane.b32.xlu0 %v1198_v17, 264  ;;  %1189 = vbcast.lane.b32.xlu1 %v1187_v14, 256  ;;  %v607_v24 = vadd.f32 %v3811_v16, %v606_v21  ;;  %v5033_v14 = vpop.trf.xlu0 }
 0x147   : > { %v646_v27 = vmax.f32 %v612_v20, 0.0 }
 0x148   : > { %v645_v32 = vmax.f32 %v607_v24, 0.0  ;;  %v3998_v33 = vpop.f32.mrb[2].mxu1 }
 0x149   : > { %v622_v34 = vadd.f32 %v3998_v33, %v3811_v16  ;;  %v616_v35 = vpop.f32.mrb[3].mxu1 }
 0x14a   : > { %1138 = vbcast.lane.b32.xlu0 %v1132_v25, 264  ;;  %1123 = vbcast.lane.b32.xlu1 %v1121_v15, 256  ;;  %v617_v36 = vadd.f32 %v3811_v16, %v616_v35  ;;  %v4293_v15 = vpack.c.bf16 %v2472_v12, %v2471_v10  ;;  %v1352_v35 = vrot.slane %v5033_v14, %v4935_v19 }
 0x14b   : > { %4037 = vmatprep.mubr.f32.mxu1 %v645_v32  ;;  %v648_v39 = vmax.f32 %v622_v34, 0.0  ;;  %v5044_v32 = vld [vmem:[%s5899_s10] ss:$0 sm:$0xff] }
 0x14c   : > { %4038 = vmatmul.mubr.f32.vlgmr.msra.gmra.mrb[8].mxu1 %v646_v27  ;;  %v647_v42 = vmax.f32 %v617_v36, 0.0  ;;  %v4001_v43 = vpop.f32.mrb[4].mxu1 }
 0x14d   : > { %4272 = vmatpush3.bf16.msra.mxu1 %v4269_v5  ;;  %v632_v44 = vadd.f32 %v4001_v43, %v3811_v16  ;;  %v626_v45 = vpop.f32.mrb[5].mxu1  ;;  %v2469_v5 = vld [vmem:[#allocation7 + $0x50] sm:$0xff] }
 0x14e   : > { %1215 = vbcast.lane.b32.xlu0 %v1209_v38, 264  ;;  %1200 = vbcast.lane.b32.xlu1 %v1198_v17, 256  ;;  %v627_v46 = vadd.f32 %v3811_v16, %v626_v45  ;;  %v4289_v9 = vpack.c.bf16 %v2470_v7, %v2469_v5  ;;  %v2473_v17 = vld [vmem:[#allocation7 + $0x70] sm:$0xff]  ;;  %v1242_v7 = vrot.slane %v5000_v11, %v4979_v53 }
 0x14f   : > { %4274 = vmatprep.subr.bf16.mxu1 %v4273_v37  ;;  %4040 = vmatprep.mubr.f32.mxu1 %v647_v42  ;;  %v650_v49 = vmax.f32 %v632_v44, 0.0  ;;  %v4297_v20 = vpack.c.bf16 %v2474_v18, %v2473_v17  ;;  %v1363_v44 = vrot.slane %v5033_v14, %v4942_v22 }
 0x150   : > { %4041 = vmatmul.mubr.f32.gmra.mrb[10].mxu1 %v648_v39  ;;  %v649_v52 = vmax.f32 %v627_v46, 0.0  ;;  %v4004_v54 = vpop.f32.mrb[6].mxu1 }
 0x151   : > { %4276 = vmatpush3.bf16.msra.mxu1 %v4273_v37  ;;  %v642_v55 = vadd.f32 %v4004_v54, %v3811_v16  ;;  %v636_v56 = vpop.f32.mrb[7].mxu1 }
 0x152   : > { %1149 = vbcast.lane.b32.xlu0 %v1143_v48, 264  ;;  %1134 = vbcast.lane.b32.xlu1 %v1132_v25, 256  ;;  %v637_v58 = vadd.f32 %v3811_v16, %v636_v56  ;;  %v1154_v16 = vrot.slane %v4990_v6, %v4979_v53  ;;  %v1231_v25 = vrot.slane %v5000_v11, %v4962_v30 }
 0x153   : > { %4278 = vmatprep.subr.bf16.mxu1 %v4277_v47  ;;  %4043 = vmatprep.mubr.f32.mxu1 %v649_v52  ;;  %v652_v61 = vmax.f32 %v642_v55, 0.0  ;;  %v1165_v55 = vrot.slane %v4990_v6, %v4986_v62 }
 0x154   : > { %4044 = vmatmul.mubr.f32.gmra.mrb[12].mxu1 %v650_v49  ;;  %v651_v1 = vmax.f32 %v637_v58, 0.0 }
 0x155   : > { %4280 = vmatpush3.bf16.msra.mxu1 %v4277_v47 }
 0x156   : > { %1226 = vbcast.lane.b32.xlu0 %v1220_v60, 264  ;;  %1211 = vbcast.lane.b32.xlu1 %v1209_v38, 256 }
 0x157   : > { %4282 = vmatprep.subr.bf16.mxu1 %v4281_v59  ;;  %4046 = vmatprep.mubr.f32.mxu1 %v651_v1 }
 0x158   : > { %4047 = vmatmul.mubr.f32.gmra.mrb[14].mxu1 %v652_v61 }
 0x159   : > { %4284 = vmatpush3.bf16.msra.mxu1 %v4281_v59 }
 0x15a   : > { %1145 = vbcast.lane.b32.xlu1 %v1143_v48, 256  ;;  %1270 = vbcast.lane.b32.xlu0 %v1264_v2, 264 }
 0x15b   : > { %4286 = vmatprep.subr.bf16.mxu1 %v4285_v3 }
 0x15d   : > { %4288 = vmatpush3.bf16.msra.mxu1 %v4285_v3 }
 0x15e   : > { %1222 = vbcast.lane.b32.xlu1 %v1220_v60, 256  ;;  %1281 = vbcast.lane.b32.xlu0 %v1275_v8, 264 }
 0x15f   : > { %4290 = vmatprep.subr.bf16.mxu1 %v4289_v9 }
 0x161   : > { %4292 = vmatpush3.bf16.msra.mxu1 %v4289_v9 }
 0x162   : > { %1160 = vbcast.lane.b32.xlu0 %v1154_v16, 264  ;;  %1266 = vbcast.lane.b32.xlu1 %v1264_v2, 256 }
 0x163   : > { %4294 = vmatprep.subr.bf16.mxu1 %v4293_v15 }
 0x164   : > { %v919_v21 = vpop.permute.xlu1 %918  ;;  %v915_v24 = vpop.permute.xlu0 %914 }
 0x165   : > { %4296 = vmatpush3.bf16.msra.mxu1 %v4293_v15  ;;  %v1621_v37 = vmul.f32 %v5044_v32, %v919_v21  ;;  %v1620_v38 = vmul.f32 %v5044_v32, %v915_v24  ;;  %v1297_v21 = vrot.slane %v5021_v57, %v4952_v26 }
 0x166   : > { %1237 = vbcast.lane.b32.xlu0 %v1231_v25, 264  ;;  %1277 = vbcast.lane.b32.xlu1 %v1275_v8, 256 }
 0x167   : > { %4298 = vmatprep.subr.bf16.mxu1 %v4297_v20  ;;  %v1756_v47 = vadd.f32 %v5055_v40, %v1621_v37  ;;  %v1755_v48 = vadd.f32 %v5055_v40, %v1620_v38 }
 0x168   : > { %v926_v27 = vpop.permute.xlu1 %925  ;;  %v941_v29 = vpop.permute.xlu0 %940 }
 0x169   : > { %4300 = vmatpush3.bf16.msra.mxu1 %v4297_v20  ;;  %v1622_v39 = vmul.f32 %v5044_v32, %v926_v27  ;;  %v1625_v41 = vmul.f32 %v5044_v32, %v941_v29  ;;  %v1884_v61 = vmax.f32 %v1756_v47, 0.0  ;;  %v1883_v63 = vmax.f32 %v1755_v48, 0.0 }
 0x16a   : > { %1292 = vbcast.lane.b32.xlu0 %v1286_v31, 264  ;;  %1156 = vbcast.lane.b32.xlu1 %v1154_v16, 256 }
 0x16b   : > { %v1757_v49 = vadd.f32 %v5055_v40, %v1622_v39  ;;  %v1760_v51 = vadd.f32 %v5055_v40, %v1625_v41  ;;  %v2011_v15 = vadd.f32 %v1884_v61, %v1883_v63  ;;  %v1374_v41 = vrot.slane %v5033_v14, %v4945_v23 }
 0x16c   : > { %v930_v33 = vpop.permute.xlu1 %929  ;;  %v952_v34 = vpop.permute.xlu0 %951  ;;  %v5097_v61 = vrot.slane %v5021_v57, %v4962_v30  ;;  %v5101_v63 = vrot.slane %v5027_v4, %v4935_v19 }
 0x16d   : > { %v1623_v36 = vmul.f32 %v5044_v32, %v930_v33  ;;  %v1627_v58 = vmul.f32 %v5044_v32, %v952_v34  ;;  %v1885_v0 = vmax.f32 %v1757_v49, 0.0  ;;  %v1888_v1 = vmax.f32 %v1760_v51, 0.0 }
 0x16e   : > { %1233 = vbcast.lane.b32.xlu1 %v1231_v25, 256  ;;  %1358 = vbcast.lane.b32.xlu0 %v1352_v35, 264  ;;  %v2012_v34 = vrot.slane %v2011_v15, 4 }
 0x16f   : > { %v1758_v45 = vadd.f32 %v5055_v40, %v1623_v36  ;;  %v1762_v8 = vadd.f32 %v5055_v40, %v1627_v58  ;;  %v5093_v58 = vrot.slane %v5021_v57, %v4957_v28 }
 0x170   : > { %v937_v42 = vpop.permute.xlu1 %936  ;;  %v963_v43 = vpop.permute.xlu0 %962 }
 0x171   : > { %v1624_v46 = vmul.f32 %v5044_v32, %v937_v42  ;;  %v1886_v56 = vmax.f32 %v1758_v45, 0.0  ;;  %v1629_v9 = vmul.f32 %v5044_v32, %v963_v43  ;;  %v1890_v25 = vmax.f32 %v1762_v8, 0.0 }
 0x172   : > { %1288 = vbcast.lane.b32.xlu1 %v1286_v31, 256  ;;  %1369 = vbcast.lane.b32.xlu0 %v1363_v44, 264 }
 0x173   : > { %v1759_v50 = vadd.f32 %v5055_v40, %v1624_v46  ;;  %v2018_v6 = vadd.f32 %v1886_v56, %v1885_v0  ;;  %v1764_v27 = vadd.f32 %v5055_v40, %v1629_v9  ;;  %v2013_v46 = vadd.f32 %v2012_v34, %v2011_v15 }
 0x174   : > { %v948_v52 = vpop.permute.xlu1 %947  ;;  %v974_v54 = vpop.permute.xlu0 %973  ;;  %v5113_v9 = vrot.slane %v5021_v57, %v4979_v53  ;;  %v5121_v15 = vrot.slane %v5021_v57, %v4986_v62 }
 0x175   : > { %v1887_v59 = vmax.f32 %v1759_v50, 0.0  ;;  %v1626_v60 = vmul.f32 %v5044_v32, %v948_v52  ;;  %v2019_v24 = vrot.slane %v2018_v6, 4  ;;  %v1631_v31 = vmul.f32 %v5044_v32, %v974_v54 }
 0x176   : > { %1171 = vbcast.lane.b32.xlu0 %v1165_v55, 264  ;;  %1354 = vbcast.lane.b32.xlu1 %v1352_v35, 256  ;;  %v1892_v43 = vmax.f32 %v1764_v27, 0.0  ;;  %v2014_v0 = vrot.slane %v2013_v46, 2 }
 0x177   : > { %v1761_v2 = vadd.f32 %v5055_v40, %v1626_v60  ;;  %v2025_v12 = vadd.f32 %v1888_v1, %v1887_v59  ;;  %v2020_v42 = vadd.f32 %v2019_v24, %v2018_v6  ;;  %v1766_v45 = vadd.f32 %v5055_v40, %v1631_v31 }
 0x178   : > { %v959_v3 = vpop.permute.xlu1 %958  ;;  %v1007_v5 = vpop.permute.xlu0 %1006  ;;  %v2015_v24 = vadd.f32 %v2014_v0, %v2013_v46 }
 0x179   : > { %v1628_v10 = vmul.f32 %v5044_v32, %v959_v3  ;;  %v1889_v16 = vmax.f32 %v1761_v2, 0.0  ;;  %v2026_v29 = vrot.slane %v2025_v12, 4  ;;  %v1637_v49 = vmul.f32 %v5044_v32, %v1007_v5 }
 0x17a   : > { %1248 = vbcast.lane.b32.xlu0 %v1242_v7, 264  ;;  %1365 = vbcast.lane.b32.xlu1 %v1363_v44, 256  ;;  %v2021_v56 = vrot.slane %v2020_v42, 2  ;;  %v1894_v60 = vmax.f32 %v1766_v45, 0.0  ;;  %v5105_v2 = vrot.slane %v5027_v4, %v4942_v22  ;;  %v5149_v45 = vrot.slane %v5031_v13, %v4942_v22 }
 0x17b   : > { %v1763_v17 = vadd.f32 %v5055_v40, %v1628_v10  ;;  %v2032_v35 = vadd.f32 %v1890_v25, %v1889_v16  ;;  %v2027_v44 = vadd.f32 %v2026_v29, %v2025_v12  ;;  %v1772_v3 = vadd.f32 %v5055_v40, %v1637_v49 }
 0x17c   : > { %v970_v18 = vpop.permute.xlu1 %969  ;;  %v1018_v20 = vpop.permute.xlu0 %1017  ;;  %v2022_v10 = vadd.f32 %v2021_v56, %v2020_v42  ;;  %v5117_v12 = vrot.slane %v5027_v4, %v4945_v23  ;;  %v5125_v16 = vrot.slane %v5027_v4, %v4952_v26  ;;  %v5143_v42 = vrot.slane %v5031_v13, %v4935_v19 }
 0x17d   : > { %v1630_v33 = vmul.f32 %v5044_v32, %v970_v18  ;;  %v1891_v36 = vmax.f32 %v1763_v17, 0.0  ;;  %v2033_v47 = vrot.slane %v2032_v35, 4  ;;  %v2028_v59 = vrot.slane %v2027_v44, 2 }
 0x17e   : > { %1303 = vbcast.lane.b32.xlu0 %v1297_v21, 264  ;;  %1167 = vbcast.lane.b32.xlu1 %v1165_v55, 256  ;;  %v1253_v55 = vrot.slane %v5000_v11, %v4986_v62  ;;  %v1639_v29 = vmul.f32 %v5044_v32, %v1018_v20  ;;  %v1900_v57 = vmax.f32 %v1772_v3, 0.0  ;;  %v2016_v46 = vrot.slane %v2015_v24, 1 }
 0x17f   : > { %v1765_v37 = vadd.f32 %v5055_v40, %v1630_v33  ;;  %v2039_v48 = vadd.f32 %v1892_v43, %v1891_v36  ;;  %v2034_v1 = vadd.f32 %v2033_v47, %v2032_v35  ;;  %v2029_v17 = vadd.f32 %v2028_v59, %v2027_v44 }
 0x180   : > { %v1003_v38 = vpop.permute.xlu1 %1002  ;;  %v1029_v39 = vpop.permute.xlu0 %1028  ;;  %v5134_v36 = vrot.slane %v5033_v14, %v4957_v28  ;;  %v1774_v49 = vadd.f32 %v5055_v40, %v1639_v29 }
 0x181   : > { %v1893_v50 = vmax.f32 %v1765_v37, 0.0  ;;  %v1636_v51 = vmul.f32 %v5044_v32, %v1003_v38  ;;  %v2040_v11 = vrot.slane %v2039_v48, 4  ;;  %v2035_v25 = vrot.slane %v2034_v1, 2 }
 0x182   : > { %1380 = vbcast.lane.b32.xlu0 %v1374_v41, 264  ;;  %1244 = vbcast.lane.b32.xlu1 %v1242_v7, 256  ;;  %v2023_v37 = vrot.slane %v2022_v10, 1  ;;  %v2030_v20 = vrot.slane %v2029_v17, 1  ;;  %v1641_v43 = vmul.f32 %v5044_v32, %v1029_v39  ;;  %v1902_v3 = vmax.f32 %v1774_v49, 0.0 }
 0x183   : > { %v2046_v5 = vadd.f32 %v1894_v60, %v1893_v50  ;;  %v1771_v7 = vadd.f32 %v5055_v40, %v1636_v51  ;;  %v2041_v27 = vadd.f32 %v2040_v11, %v2039_v48  ;;  %v2036_v47 = vadd.f32 %v2035_v25, %v2034_v1 }
 0x184   : > { %v1014_v52 = vpop.permute.xlu1 %1013  ;;  %v1040_v54 = vpop.permute.xlu0 %1039  ;;  %v2024_v56 = vadd.f32 %v2023_v37, %v2022_v10  ;;  %v2031_v22 = vadd.f32 %v2030_v20, %v2029_v17  ;;  %v1776_v60 = vadd.f32 %v5055_v40, %v1641_v43  ;;  %v2017_v1 = vadd.f32 %v2016_v46, %v2015_v24 }
 0x185   : > { %v1638_v18 = vmul.f32 %v5044_v32, %v1014_v52  ;;  %v2047_v31 = vrot.slane %v2046_v5, 4  ;;  %v1899_v33 = vmax.f32 %v1771_v7, 0.0  ;;  %v2042_v48 = vrot.slane %v2041_v27, 2 }
 0x186   : > { %1259 = vbcast.lane.b32.xlu0 %v1253_v55, 264  ;;  %1299 = vbcast.lane.b32.xlu1 %v1297_v21, 256  ;;  %v1385_v21 = vrot.slane %v5033_v14, %v4952_v26  ;;  %v1643_v19 = vmul.f32 %v5044_v32, %v1040_v54  ;;  %v2037_v11 = vrot.slane %v2036_v47, 1  ;;  %v1904_v24 = vmax.f32 %v1776_v60, 0.0 }
 0x187   : > { %v1773_v44 = vadd.f32 %v5055_v40, %v1638_v18  ;;  %v2048_v50 = vadd.f32 %v2047_v31, %v2046_v5  ;;  %v2067_v51 = vadd.f32 %v1900_v57, %v1899_v33  ;;  %v2043_v54 = vadd.f32 %v2042_v48, %v2041_v27 }
 0x188   : > { %v1025_v6 = vpop.permute.xlu1 %1024  ;;  %v5109_v8 = vpop.permute.xlu0 %1050 }
 0x189   : > { %v1640_v38 = vmul.f32 %v5044_v32, %v1025_v6  ;;  %v1901_v0 = vmax.f32 %v1773_v44, 0.0  ;;  %v2049_v5 = vrot.slane %v2048_v50, 2  ;;  %v2068_v7 = vrot.slane %v2067_v51, 4 }
 0x18a   : > { %1314 = vbcast.lane.b32.xlu0 %v5093_v58, 264  ;;  %1376 = vbcast.lane.b32.xlu1 %v1374_v41, 256  ;;  %v5139_v41 = vrot.slane %v5033_v14, %v4962_v30  ;;  %v1778_v6 = vadd.f32 %v5055_v40, %v1643_v19  ;;  %v1645_v37 = vmul.f32 %v5044_v32, %v5109_v8 }
 0x18b   : > { %v2074_v31 = vadd.f32 %v1902_v3, %v1901_v0  ;;  %v5169_v20 = vadd.f32 %v2049_v5, %v2048_v50  ;;  %v2069_v43 = vadd.f32 %v2068_v7, %v2067_v51 }
 0x18c   : > { %v1036_v34 = vpop.permute.xlu1 %1035  ;;  %v985_v35 = vpop.permute.xlu0 %984  ;;  %v1906_v44 = vmax.f32 %v1778_v6, 0.0  ;;  %v1780_v51 = vadd.f32 %v5055_v40, %v1645_v37 }
 0x18d   : > { %v1633_v59 = vmul.f32 %v5044_v32, %v985_v35  ;;  %v1642_v10 = vmul.f32 %v5044_v32, %v1036_v34  ;;  %v2038_v34 = vadd.f32 %v2037_v11, %v2036_v47  ;;  %v2044_v35 = vrot.slane %v2043_v54, 1 }
 0x18e   : > { %1391 = vbcast.lane.b32.xlu0 %v1385_v21, 264  ;;  %1255 = vbcast.lane.b32.xlu1 %v1253_v55, 256  ;;  %v1775_v55 = vadd.f32 %v5055_v40, %v1640_v38  ;;  %v2075_v47 = vrot.slane %v2074_v31, 4  ;;  %v2070_v0 = vrot.slane %v2069_v43, 2  ;;  %v2051_v7 = vrot.slane %v5169_v20, 1 }
 0x18f   : > { %v1768_v29 = vadd.f32 %v5055_v40, %v1633_v59  ;;  %v1777_v46 = vadd.f32 %v5055_v40, %v1642_v10  ;;  %v2045_v50 = vadd.f32 %v2044_v35, %v2043_v54 }
 0x190   : > { %v1047_v52 = vpop.permute.xlu1 %1046  ;;  %v1062_v39 = vpop.permute.xlu0 %1061  ;;  %v1903_v25 = vmax.f32 %v1775_v55, 0.0  ;;  %v2076_v54 = vadd.f32 %v2075_v47, %v2074_v31 }
 0x191   : > { %v1644_v27 = vmul.f32 %v5044_v32, %v1047_v52  ;;  %v1896_v52 = vmax.f32 %v1768_v29, 0.0  ;;  %v1647_v8 = vmul.f32 %v5044_v32, %v1062_v39  ;;  %v1908_v29 = vmax.f32 %v1780_v51, 0.0 }
 0x192   : > { %1325 = vbcast.lane.b32.xlu0 %v5097_v61, 264  ;;  %1310 = vbcast.lane.b32.xlu1 %v5093_v58, 256  ;;  %v2547_v58 = vsel %vm2546_vm2, %v2024_v56, %v2017_v1  ;;  %v2081_v19 = vadd.f32 %v1904_v24, %v1903_v25  ;;  %v1905_v1 = vmax.f32 %v1777_v46, 0.0 }
 0x193   : > { %v2549_v33 = vsel %vm2548_vm3, %v2031_v22, %v2547_v58  ;;  %v1779_v55 = vadd.f32 %v5055_v40, %v1644_v27  ;;  %v1782_v25 = vadd.f32 %v5055_v40, %v1647_v8 }
 0x194   : > { %v981_v18 = vpop.permute.xlu1 %980  ;;  %v996_v17 = vpop.permute.xlu0 %995  ;;  %v2551_v60 = vsel %vm2550_vm4, %v2038_v34, %v2549_v33  ;;  %v2088_v27 = vadd.f32 %v1906_v44, %v1905_v1  ;;  %v5195_v44 = vadd.f32 %v2070_v0, %v2069_v43 }
 0x195   : > { %v1632_v57 = vmul.f32 %v5044_v32, %v981_v18  ;;  %v1635_v56 = vmul.f32 %v5044_v32, %v996_v17  ;;  %v2082_v18 = vrot.slane %v2081_v19, 4  ;;  %v1907_v17 = vmax.f32 %v1779_v55, 0.0 }
 0x196   : > { %1402 = vbcast.lane.b32.xlu0 %v5134_v36, 264  ;;  %1387 = vbcast.lane.b32.xlu1 %v1385_v21, 256  ;;  %v2553_v37 = vsel %vm2552_vm5, %v2045_v50, %v2551_v60 }
 0x197   : > { %v1767_v38 = vadd.f32 %v5055_v40, %v1632_v57  ;;  %v1770_v10 = vadd.f32 %v5055_v40, %v1635_v56  ;;  %v1910_v56 = vmax.f32 %v1782_v25, 0.0 }
 0x198   : > { %v1058_v48 = vpop.permute.xlu1 %1057  ;;  %v1073_v49 = vpop.permute.xlu0 %1072 }
 0x199   : > { %v1895_v21 = vmax.f32 %v1767_v38, 0.0  ;;  %v1646_v59 = vmul.f32 %v5044_v32, %v1058_v48  ;;  %v1649_v3 = vmul.f32 %v5044_v32, %v1073_v49  ;;  %v1898_v46 = vmax.f32 %v1770_v10, 0.0 }
 0x19a   : > { %1446 = vbcast.lane.b32.xlu0 %v5101_v63, 264  ;;  %1321 = vbcast.lane.b32.xlu1 %v5097_v61, 256  ;;  %v2077_v49 = vrot.slane %v2076_v54, 2 }
 0x19b   : > { %v2053_v22 = vadd.f32 %v1896_v52, %v1895_v21  ;;  %v1781_v11 = vadd.f32 %v5055_v40, %v1646_v59  ;;  %v1784_v34 = vadd.f32 %v5055_v40, %v1649_v3  ;;  %v2083_v52 = vadd.f32 %v2082_v18, %v2081_v19 }
 0x19c   : > { %v992_v5 = vpop.permute.xlu1 %991  ;;  %v1095_v39 = vpop.permute.xlu0 %1094  ;;  %v2095_v21 = vadd.f32 %v1908_v29, %v1907_v17  ;;  %v2089_v59 = vrot.slane %v2088_v27, 4  ;;  %v2072_v17 = vrot.slane %v5195_v44, 1 }
 0x19d   : > { %v2054_v6 = vrot.slane %v2053_v22, 4  ;;  %v1634_v61 = vmul.f32 %v5044_v32, %v992_v5  ;;  %v1653_v24 = vmul.f32 %v5044_v32, %v1095_v39  ;;  %v1909_v33 = vmax.f32 %v1781_v11, 0.0 }
 0x19e   : > { %1457 = vbcast.lane.b32.xlu0 %v5105_v2, 264  ;;  %1398 = vbcast.lane.b32.xlu1 %v5134_v36, 256  ;;  %v1912_v51 = vmax.f32 %v1784_v34, 0.0  ;;  %v2084_v43 = vrot.slane %v2083_v52, 2  ;;  %v2096_v0 = vrot.slane %v2095_v21, 4  ;;  %v2052_v39 = vadd.f32 %v2051_v7, %v5169_v20 }
 0x19f   : > { %v2055_v57 = vadd.f32 %v2054_v6, %v2053_v22  ;;  %v1769_v58 = vadd.f32 %v5055_v40, %v1634_v61  ;;  %v1788_v55 = vadd.f32 %v5055_v40, %v1653_v24  ;;  %v2102_v50 = vadd.f32 %v1910_v56, %v1909_v33 }
 0x1a0   : > { %v1069_v31 = vpop.permute.xlu1 %1068  ;;  %v1106_v35 = vpop.permute.xlu0 %1105  ;;  %v2090_v25 = vadd.f32 %v2089_v59, %v2088_v27  ;;  %v2097_v33 = vadd.f32 %v2096_v0, %v2095_v21  ;;  %v2555_v27 = vsel %vm2554_vm6, %v2052_v39, %v2553_v37 }
 0x1a1   : > { %v2056_v38 = vrot.slane %v2055_v57, 2  ;;  %v1897_v48 = vmax.f32 %v1769_v58, 0.0  ;;  %v1648_v36 = vmul.f32 %v5044_v32, %v1069_v31  ;;  %v1655_v22 = vmul.f32 %v5044_v32, %v1106_v35 }
 0x1a2   : > { %1336 = vbcast.lane.b32.xlu0 %v5113_v9, 264  ;;  %1442 = vbcast.lane.b32.xlu1 %v5101_v63, 256  ;;  %v5201_v63 = vadd.f32 %v2077_v49, %v2076_v54  ;;  %v1916_v10 = vmax.f32 %v1788_v55, 0.0  ;;  %v2103_v54 = vrot.slane %v2102_v50, 4 }
 0x1a3   : > { %v2060_v47 = vadd.f32 %v1898_v46, %v1897_v48  ;;  %v1783_v8 = vadd.f32 %v5055_v40, %v1648_v36  ;;  %v2057_v1 = vadd.f32 %v2056_v38, %v2055_v57  ;;  %v1790_v29 = vadd.f32 %v5055_v40, %v1655_v22 }
 0x1a4   : > { %v1091_v60 = vpop.permute.xlu1 %1090  ;;  %v1084_v19 = vpop.permute.xlu0 %1083  ;;  %v2079_v35 = vrot.slane %v5201_v63, 1  ;;  %v2085_v38 = vadd.f32 %v2084_v43, %v2083_v52  ;;  %v2091_v36 = vrot.slane %v2090_v25, 2  ;;  %v2104_v49 = vadd.f32 %v2103_v54, %v2102_v50 }
 0x1a5   : > { %v2061_v11 = vrot.slane %v2060_v47, 4  ;;  %v1911_v3 = vmax.f32 %v1783_v8, 0.0  ;;  %v1652_v5 = vmul.f32 %v5044_v32, %v1091_v60  ;;  %v2058_v7 = vrot.slane %v2057_v1, 1 }
 0x1a6   : > { %1413 = vbcast.lane.b32.xlu0 %v5139_v41, 264  ;;  %1453 = vbcast.lane.b32.xlu1 %v5105_v2, 256  ;;  %v1651_v34 = vmul.f32 %v5044_v32, %v1084_v19  ;;  %v1918_v8 = vmax.f32 %v1790_v29, 0.0  ;;  %v2086_v19 = vrot.slane %v2085_v38, 1 }
 0x1a7   : > { %v2062_v6 = vadd.f32 %v2061_v11, %v2060_v47  ;;  %v2109_v61 = vadd.f32 %v1912_v51, %v1911_v3  ;;  %v1787_v18 = vadd.f32 %v5055_v40, %v1652_v5  ;;  %v2059_v22 = vadd.f32 %v2058_v7, %v2057_v1 }
 0x1a8   : > { %v1102_v57 = vpop.permute.xlu1 %1101  ;;  %v5209_v58 = vpop.permute.xlu0 %1116  ;;  %v1786_v60 = vadd.f32 %v5055_v40, %v1651_v34  ;;  %v2105_v5 = vrot.slane %v2104_v49, 2 }
 0x1a9   : > { %v2110_v24 = vrot.slane %v2109_v61, 4  ;;  %v1915_v2 = vmax.f32 %v1787_v18, 0.0  ;;  %v1654_v20 = vmul.f32 %v5044_v32, %v1102_v57  ;;  %v2063_v31 = vrot.slane %v2062_v6, 2 }
 0x1aa   : > { %1468 = vbcast.lane.b32.xlu0 %v5117_v12, 264  ;;  %1332 = vbcast.lane.b32.xlu1 %v5113_v9, 256  ;;  %v2098_v9 = vrot.slane %v2097_v33, 2  ;;  %v2557_v54 = vsel %vm2556_vm7, %v2059_v22, %v2555_v27  ;;  %v2106_v34 = vadd.f32 %v2105_v5, %v2104_v49 }
 0x1ab   : > { %v2123_v46 = vadd.f32 %v1916_v10, %v1915_v2  ;;  %v1789_v48 = vadd.f32 %v5055_v40, %v1654_v20  ;;  %v2111_v56 = vadd.f32 %v2110_v24, %v2109_v61  ;;  %v2064_v55 = vadd.f32 %v2063_v31, %v2062_v6 }
 0x1ac   : > { %v1080_v47 = vpop.permute.xlu1 %1079  ;;  %v1183_v21 = vpop.permute.xlu0 %1182  ;;  %v2092_v10 = vadd.f32 %v2091_v36, %v2090_v25  ;;  %v2099_v29 = vadd.f32 %v2098_v9, %v2097_v33  ;;  %v2080_v2 = vadd.f32 %v2079_v35, %v5201_v63  ;;  %v5232_v25 = vrot.slane %v5033_v14, %v4979_v53 }
 0x1ad   : > { %v2124_v59 = vrot.slane %v2123_v46, 4  ;;  %v1917_v51 = vmax.f32 %v1789_v48, 0.0  ;;  %v1650_v37 = vmul.f32 %v5044_v32, %v1080_v47  ;;  %v2065_v52 = vrot.slane %v2064_v55, 1 }
 0x1ae   : > { %1534 = vbcast.lane.b32.xlu0 %v5143_v42, 264  ;;  %1409 = vbcast.lane.b32.xlu1 %v5139_v41, 256  ;;  %v1669_v3 = vmul.f32 %v5044_v32, %v1183_v21  ;;  %v2112_v43 = vrot.slane %v2111_v56, 2  ;;  %v1914_v41 = vmax.f32 %v1786_v60, 0.0  ;;  %v2087_v47 = vadd.f32 %v2086_v19, %v2085_v38 }
 0x1af   : > { %v2125_v50 = vadd.f32 %v2124_v59, %v2123_v46  ;;  %v2130_v11 = vadd.f32 %v1918_v8, %v1917_v51  ;;  %v1785_v0 = vadd.f32 %v5055_v40, %v1650_v37  ;;  %v2066_v6 = vadd.f32 %v2065_v52, %v2064_v55 }
 0x1b0   : > { %v1113_v1 = vpop.permute.xlu1 %1112  ;;  %v1194_v39 = vpop.permute.xlu0 %1193  ;;  %v1804_v7 = vadd.f32 %v5055_v40, %v1669_v3  ;;  %v2113_v33 = vadd.f32 %v2112_v43, %v2111_v56  ;;  %v2093_v21 = vrot.slane %v2092_v10, 1  ;;  %v2100_v55 = vrot.slane %v2099_v29, 1 }
 0x1b1   : > { %v2126_v61 = vrot.slane %v2125_v50, 2  ;;  %v2131_v18 = vrot.slane %v2130_v11, 4  ;;  %v1913_v57 = vmax.f32 %v1785_v0, 0.0  ;;  %v2559_v24 = vsel %vm2558_vm8, %v2066_v6, %v2557_v54 }
 0x1b2   : > { %1545 = vbcast.lane.b32.xlu0 %v5149_v45, 264  ;;  %1464 = vbcast.lane.b32.xlu1 %v5117_v12, 256  ;;  %v2073_v12 = vadd.f32 %v2072_v17, %v5195_v44  ;;  %v1671_v35 = vmul.f32 %v5044_v32, %v1194_v39  ;;  %v1932_v59 = vmax.f32 %v1804_v7, 0.0  ;;  %v2107_v44 = vrot.slane %v2106_v34, 1 }
 0x1b3   : > { %v2132_v20 = vadd.f32 %v2131_v18, %v2130_v11  ;;  %4081 = vmatprep.mubr.f32.mxu1 %v2559_v24  ;;  %v2127_v31 = vadd.f32 %v2126_v61, %v2125_v50  ;;  %v2116_v27 = vadd.f32 %v1914_v41, %v1913_v57  ;;  %v2114_v17 = vrot.slane %v2113_v33, 1 }
 0x1b4   : > { %v1179_v46 = vpop.permute.xlu1 %1178  ;;  %v5234_v48 = vpop.permute.xlu0 %1127  ;;  %v2560_v49 = vsel %vm2546_vm2, %v2080_v2, %v2073_v12  ;;  %v1806_v52 = vadd.f32 %v5055_v40, %v1671_v35  ;;  %v2094_v11 = vadd.f32 %v2093_v21, %v2092_v10  ;;  %v2101_v3 = vadd.f32 %v2100_v55, %v2099_v29 }
 0x1b5   : > { %v2133_v63 = vrot.slane %v2132_v20, 2  ;;  %v1668_v36 = vmul.f32 %v5044_v32, %v1179_v46  ;;  %v2117_v8 = vrot.slane %v2116_v27, 4  ;;  %v2128_v22 = vrot.slane %v2127_v31, 1 }
 0x1b6   : > { %1530 = vbcast.lane.b32.xlu1 %v5143_v42, 256  ;;  %1347 = vbcast.lane.b32.xlu0 %v5121_v15, 264  ;;  %v2561_v50 = vsel %vm2548_vm3, %v2087_v47, %v2560_v49  ;;  %v1656_v0 = vmul.f32 %v5044_v32, %v1113_v1  ;;  %v2108_v61 = vadd.f32 %v2107_v44, %v2106_v34  ;;  %v1934_v24 = vmax.f32 %v1806_v52, 0.0 }
 0x1b7   : > { %v2134_v56 = vadd.f32 %v2133_v63, %v2132_v20  ;;  %v1803_v51 = vadd.f32 %v5055_v40, %v1668_v36  ;;  %v2118_v9 = vadd.f32 %v2117_v8, %v2116_v27  ;;  %v2129_v18 = vadd.f32 %v2128_v22, %v2127_v31 }
 0x1b8   : > { %v1190_v60 = vpop.permute.xlu1 %1189  ;;  %v5245_v37 = vpop.permute.xlu0 %1204  ;;  %v1657_v54 = vmul.f32 %v5044_v32, %v5209_v58  ;;  %v2115_v29 = vadd.f32 %v2114_v17, %v2113_v33  ;;  %v2562_v1 = vsel %vm2550_vm4, %v2094_v11, %v2561_v50  ;;  %v1791_v58 = vadd.f32 %v5055_v40, %v1656_v0 }
 0x1b9   : > { %v2135_v38 = vrot.slane %v2134_v56, 1  ;;  %v1931_v19 = vmax.f32 %v1803_v51, 0.0  ;;  %v1670_v42 = vmul.f32 %v5044_v32, %v1190_v60  ;;  %v2119_v5 = vrot.slane %v2118_v9, 2 }
 0x1ba   : > { %1541 = vbcast.lane.b32.xlu1 %v5149_v45, 256  ;;  %1424 = vbcast.lane.b32.xlu0 %v5232_v25, 264  ;;  %v2563_v27 = vsel %vm2552_vm5, %v2101_v3, %v2562_v1  ;;  %v1550_v12 = vrot.slane %v5031_v13, %v4945_v23  ;;  %v1792_v35 = vadd.f32 %v5055_v40, %v1657_v54  ;;  %v1919_v49 = vmax.f32 %v1791_v58, 0.0 }
 0x1bb   : > { %v2136_v43 = vadd.f32 %v2135_v38, %v2134_v56  ;;  %v2179_v39 = vadd.f32 %v1932_v59, %v1931_v19  ;;  %v1805_v6 = vadd.f32 %v5055_v40, %v1670_v42  ;;  %v2120_v41 = vadd.f32 %v2119_v5, %v2118_v9 }
 0x1bc   : > { %v1124_v57 = vpop.permute.xlu1 %1123  ;;  %v5256_v10 = vpop.permute.xlu0 %1138  ;;  %v2564_v63 = vsel %vm2554_vm6, %v2108_v61, %v2563_v27  ;;  %v1659_v59 = vmul.f32 %v5044_v32, %v5234_v48  ;;  %v1429_v17 = vrot.slane %v5033_v14, %v4986_v62  ;;  %v1920_v22 = vmax.f32 %v1792_v35, 0.0 }
 0x1bd   : > { %v2180_v45 = vrot.slane %v2179_v39, 4  ;;  %v1933_v2 = vmax.f32 %v1805_v6, 0.0  ;;  %v2121_v20 = vrot.slane %v2120_v41, 1  ;;  %v5262_v7 = vsel %vm2546_vm2, %v2136_v43, %v2129_v18 }
 0x1be   : > { %1343 = vbcast.lane.b32.xlu1 %v5121_v15, 256  ;;  %1479 = vbcast.lane.b32.xlu0 %v5125_v16, 264  ;;  %v2565_v21 = vsel %vm2556_vm7, %v2115_v29, %v2564_v63  ;;  %v1658_v55 = vmul.f32 %v5044_v32, %v1124_v57  ;;  %v1794_v19 = vadd.f32 %v5055_v40, %v1659_v59 }
 0x1bf   : > { %v2181_v34 = vadd.f32 %v2180_v45, %v2179_v39  ;;  %v2186_v31 = vadd.f32 %v1934_v24, %v1933_v2  ;;  %v2122_v15 = vadd.f32 %v2121_v20, %v2120_v41  ;;  %v1484_v50 = vrot.slane %v5027_v4, %v4957_v28 }
 0x1c0   : > { %v1201_v33 = vpop.permute.xlu1 %1200  ;;  %v5266_v46 = vpop.permute.xlu0 %1215  ;;  %v1793_v60 = vadd.f32 %v5055_v40, %v1658_v55  ;;  %v1922_v43 = vmax.f32 %v1794_v19, 0.0  ;;  %v1561_v6 = vrot.slane %v5031_v13, %v4952_v26  ;;  %v1673_v57 = vmul.f32 %v5044_v32, %v5245_v37 }
 0x1c1   : > { %v2182_v36 = vrot.slane %v2181_v34, 2  ;;  %v2187_v47 = vrot.slane %v2186_v31, 4  ;;  %v2566_v8 = vsel %vm2558_vm8, %v2122_v15, %v2565_v21  ;;  %v1672_v61 = vmul.f32 %v5044_v32, %v1201_v33 }
 0x1c2   : > { %1420 = vbcast.lane.b32.xlu1 %v5232_v25, 256  ;;  %1556 = vbcast.lane.b32.xlu0 %v1550_v12, 264  ;;  %v2137_v25 = vadd.f32 %v1920_v22, %v1919_v49  ;;  %v1921_v11 = vmax.f32 %v1793_v60, 0.0  ;;  %v1495_v26 = vrot.slane %v5027_v4, %v4962_v30  ;;  %v1661_v58 = vmul.f32 %v5044_v32, %v5256_v10 }
 0x1c3   : > { %v2188_v56 = vadd.f32 %v2187_v47, %v2186_v31  ;;  %4082 = vmatmul.mubr.f32.vlgmr.msra.gmra.mrb[8].mxu1 %v2566_v8  ;;  %v2183_v23 = vadd.f32 %v2182_v36, %v2181_v34  ;;  %v1807_v20 = vadd.f32 %v5055_v40, %v1672_v61  ;;  %v1808_v37 = vadd.f32 %v5055_v40, %v1673_v57 }
 0x1c4   : > { %v1135_v51 = vpop.permute.xlu1 %1134  ;;  %v1150_v44 = vpop.permute.xlu0 %1149  ;;  %v2138_v3 = vrot.slane %v2137_v25, 4  ;;  %v2144_v18 = vadd.f32 %v1922_v43, %v1921_v11  ;;  %v1572_v15 = vrot.slane %v5031_v13, %v4957_v28  ;;  %v5314_v10 = vrot.slane %v5027_v4, %v4979_v53 }
 0x1c5   : > { %v2189_v9 = vrot.slane %v2188_v56, 2  ;;  %v2184_v52 = vrot.slane %v2183_v23, 1  ;;  %v1660_v29 = vmul.f32 %v5044_v32, %v1135_v51  ;;  %v1935_v63 = vmax.f32 %v1807_v20, 0.0 }
 0x1c6   : > { %1475 = vbcast.lane.b32.xlu1 %v5125_v16, 256  ;;  %1435 = vbcast.lane.b32.xlu0 %v1429_v17, 264  ;;  %v2139_v41 = vadd.f32 %v2138_v3, %v2137_v25  ;;  %v2145_v1 = vrot.slane %v2144_v18, 4  ;;  %v5318_v36 = vrot.slane %v5031_v13, %v4962_v30  ;;  %v1796_v21 = vadd.f32 %v5055_v40, %v1661_v58 }
 0x1c7   : > { %v2190_v38 = vadd.f32 %v2189_v9, %v2188_v56  ;;  %v2185_v16 = vadd.f32 %v2184_v52, %v2183_v23  ;;  %v1795_v31 = vadd.f32 %v5055_v40, %v1660_v29  ;;  %v1936_v28 = vmax.f32 %v1808_v37, 0.0 }
 0x1c8   : > { %v5283_v42 = vpop.permute.xlu1 %1211  ;;  %v5285_v48 = vpop.permute.xlu0 %1226  ;;  %v2140_v34 = vrot.slane %v2139_v41, 2  ;;  %v2146_v47 = vadd.f32 %v2145_v1, %v2144_v18  ;;  %v1663_v49 = vmul.f32 %v5044_v32, %v1150_v44  ;;  %v5325_v56 = vrot.slane %v5027_v4, %v4986_v62 }
 0x1c9   : > { %v2191_v14 = vrot.slane %v2190_v38, 1  ;;  %v1923_v23 = vmax.f32 %v1795_v31, 0.0  ;;  %v2193_v9 = vadd.f32 %v1936_v28, %v1935_v63  ;;  %v5335_v44 = vrot.slane %v5031_v13, %v4979_v53 }
 0x1ca   : > { %1552 = vbcast.lane.b32.xlu1 %v1550_v12, 256  ;;  %1490 = vbcast.lane.b32.xlu0 %v1484_v50, 264  ;;  %v2141_v8 = vadd.f32 %v2140_v34, %v2139_v41  ;;  %v2147_v4 = vrot.slane %v2146_v47, 2  ;;  %v1674_v52 = vmul.f32 %v5044_v32, %v5283_v42  ;;  %v5345_v3 = vrot.slane %v5031_v13, %v4986_v62 }
 0x1cb   : > { %v2192_v5 = vadd.f32 %v2191_v14, %v2190_v38  ;;  %v1924_v38 = vmax.f32 %v1796_v21, 0.0  ;;  %v1675_v14 = vmul.f32 %v5044_v32, %v5266_v46 }
 0x1cc   : > { %v1146_v0 = vpop.permute.xlu1 %1145  ;;  %v1271_v39 = vpop.permute.xlu0 %1270  ;;  %v2148_v46 = vadd.f32 %v2147_v4, %v2146_v47  ;;  %v1809_v41 = vadd.f32 %v5055_v40, %v1674_v52 }
 0x1cd   : > { %v5293_v54 = vsel %vm2546_vm2, %v2192_v5, %v2185_v16  ;;  %v1685_v24 = vmul.f32 %v5044_v32, %v1271_v39  ;;  %v1662_v59 = vmul.f32 %v5044_v32, %v1146_v0  ;;  %v2151_v53 = vadd.f32 %v1924_v38, %v1923_v23 }
 0x1ce   : > { %1431 = vbcast.lane.b32.xlu1 %v1429_v17, 256  ;;  %1567 = vbcast.lane.b32.xlu0 %v1561_v6, 264  ;;  %v1798_v5 = vadd.f32 %v5055_v40, %v1663_v49  ;;  %v2194_v39 = vrot.slane %v2193_v9, 4  ;;  %v1810_v29 = vadd.f32 %v5055_v40, %v1675_v14  ;;  %v1937_v63 = vmax.f32 %v1809_v41, 0.0 }
 0x1cf   : > { %v1820_v27 = vadd.f32 %v5055_v40, %v1685_v24  ;;  %v1797_v16 = vadd.f32 %v5055_v40, %v1662_v59  ;;  %v1677_v24 = vmul.f32 %v5044_v32, %v5285_v48 }
 0x1d0   : > { %v5299_v45 = vpop.permute.xlu1 %1222  ;;  %v1282_v2 = vpop.permute.xlu0 %1281  ;;  %v5357_v31 = vadd.f32 %v2194_v39, %v2193_v9  ;;  %v1938_v48 = vmax.f32 %v1810_v29, 0.0 }
 0x1d1   : > { %v1687_v35 = vmul.f32 %v5044_v32, %v1282_v2  ;;  %v1948_v30 = vmax.f32 %v1820_v27, 0.0  ;;  %v1925_v20 = vmax.f32 %v1797_v16, 0.0  ;;  %v1926_v27 = vmax.f32 %v1798_v5, 0.0 }
 0x1d2   : > { %1486 = vbcast.lane.b32.xlu1 %v1484_v50, 256  ;;  %1501 = vbcast.lane.b32.xlu0 %v1495_v26, 264  ;;  %v2142_v50 = vrot.slane %v2141_v8, 1  ;;  %v5364_v21 = vadd.f32 %v5055_v40, %v1677_v24 }
 0x1d3   : > { %v1822_v60 = vadd.f32 %v5055_v40, %v1687_v35  ;;  %v2158_v49 = vadd.f32 %v1926_v27, %v1925_v20 }
 0x1d4   : > { %v1267_v33 = vpop.permute.xlu1 %1266  ;;  %v1161_v12 = vpop.permute.xlu0 %1160  ;;  %v2143_v13 = vadd.f32 %v2142_v50, %v2141_v8  ;;  %v1940_v52 = vmax.f32 %v5364_v21, 0.0 }
 0x1d5   : > { %v1684_v55 = vmul.f32 %v5044_v32, %v1267_v33  ;;  %v1665_v62 = vmul.f32 %v5044_v32, %v1161_v12 }
 0x1d6   : > { %1563 = vbcast.lane.b32.xlu1 %v1561_v6, 256  ;;  %1578 = vbcast.lane.b32.xlu0 %v1572_v15, 264  ;;  %v1950_v6 = vmax.f32 %v1822_v60, 0.0  ;;  %v2568_v8 = vsel %vm2548_vm3, %v2143_v13, %v5262_v7  ;;  %v5378_v7 = vld [vmem:[%s5899_s10] ss:$0 sm:$0xff] }
 0x1d7   : > { %v1819_v51 = vadd.f32 %v5055_v40, %v1684_v55  ;;  %v1800_v47 = vadd.f32 %v5055_v40, %v1665_v62 }
 0x1d8   : > { %v1278_v17 = vpop.permute.xlu1 %1277  ;;  %v5329_v22 = vpop.permute.xlu0 %1237 }
 0x1d9   : > { %v1686_v25 = vmul.f32 %v5044_v32, %v1278_v17  ;;  %v1947_v19 = vmax.f32 %v1819_v51, 0.0  ;;  %v2196_v51 = vrot.slane %v5357_v31, 2  ;;  %v1928_v4 = vmax.f32 %v1800_v47, 0.0 }
 0x1da   : > { %1497 = vbcast.lane.b32.xlu1 %v1495_v26, 256  ;;  %1512 = vbcast.lane.b32.xlu0 %v5314_v10, 264  ;;  %v2152_v26 = vrot.slane %v2151_v53, 4  ;;  %v1679_v24 = vmul.f32 %v5378_v7, %v5329_v22 }
 0x1db   : > { %v1821_v11 = vadd.f32 %v5055_v40, %v1686_v25  ;;  %v2235_v42 = vadd.f32 %v1948_v30, %v1947_v19  ;;  %v5381_v25 = vadd.f32 %v1938_v48, %v1937_v63  ;;  %v1676_v19 = vmul.f32 %v5378_v7, %v5299_v45 }
 0x1dc   : > { %v1157_v43 = vpop.permute.xlu1 %1156  ;;  %v1293_v0 = vpop.permute.xlu0 %1292  ;;  %v2153_v28 = vadd.f32 %v2152_v26, %v2151_v53  ;;  %v2159_v53 = vrot.slane %v2158_v49, 4 }
 0x1dd   : > { %v1949_v61 = vmax.f32 %v1821_v11, 0.0  ;;  %v1664_v18 = vmul.f32 %v5044_v32, %v1157_v43  ;;  %v2236_v57 = vrot.slane %v2235_v42, 4  ;;  %v1689_v12 = vmul.f32 %v5044_v32, %v1293_v0 }
 0x1de   : > { %1574 = vbcast.lane.b32.xlu1 %v1572_v15, 256  ;;  %1589 = vbcast.lane.b32.xlu0 %v5318_v36, 264  ;;  %v2149_v15 = vrot.slane %v2148_v46, 1  ;;  %v2154_v11 = vrot.slane %v2153_v28, 2 }
 0x1df   : > { %v2242_v2 = vadd.f32 %v1950_v6, %v1949_v61  ;;  %v2237_v1 = vadd.f32 %v2236_v57, %v2235_v42  ;;  %v1799_v58 = vadd.f32 %v5055_v40, %v1664_v18  ;;  %v2201_v61 = vrot.slane %v5381_v25, 4 }
 0x1e0   : > { %v1234_v34 = vpop.permute.xlu1 %1233  ;;  %v1359_v37 = vpop.permute.xlu0 %1358  ;;  %v2150_v60 = vadd.f32 %v2149_v15, %v2148_v46  ;;  %v5411_v48 = vadd.f32 %v2154_v11, %v2153_v28 }
 0x1e1   : > { %v2243_v33 = vrot.slane %v2242_v2, 4  ;;  %v2238_v35 = vrot.slane %v2237_v1, 2  ;;  %v1927_v23 = vmax.f32 %v1799_v58, 0.0  ;;  %v1701_v38 = vmul.f32 %v5378_v7, %v1359_v37 }
 0x1e2   : > { %1508 = vbcast.lane.b32.xlu1 %v5314_v10, 256  ;;  %1523 = vbcast.lane.b32.xlu0 %v5325_v56, 264  ;;  %v5372_v10 = vld [vmem:[%s5900_s11] ss:$0 sm:$0xff]  ;;  %v5397_v46 = vsel %vm2550_vm4, %v2150_v60, %v2568_v8  ;;  %v1678_v62 = vmul.f32 %v5378_v7, %v1234_v34 }
 0x1e3   : > { %v2244_v55 = vadd.f32 %v2243_v33, %v2242_v2  ;;  %v2239_v32 = vadd.f32 %v2238_v35, %v2237_v1  ;;  %v1824_v40 = vadd.f32 %v5372_v10, %v1689_v12  ;;  %v2165_v16 = vadd.f32 %v1928_v4, %v1927_v23 }
 0x1e4   : > { %v1289_v59 = vpop.permute.xlu1 %1288  ;;  %v1370_v30 = vpop.permute.xlu0 %1369  ;;  %v1836_v18 = vadd.f32 %v5372_v10, %v1701_v38  ;;  %v1811_v41 = vadd.f32 %v5372_v10, %v1676_v19  ;;  %v2160_v1 = vadd.f32 %v2159_v53, %v2158_v49  ;;  %v1813_v63 = vadd.f32 %v5372_v10, %v1678_v62 }
 0x1e5   : > { %v2245_v17 = vrot.slane %v2244_v55, 2  ;;  %v1688_v9 = vmul.f32 %v5378_v7, %v1289_v59  ;;  %v2240_v5 = vrot.slane %v2239_v32, 1  ;;  %v1952_v39 = vmax.f32 %v1824_v40, 0.0 }
 0x1e6   : > { %1585 = vbcast.lane.b32.xlu1 %v5318_v36, 256  ;;  %1600 = vbcast.lane.b32.xlu0 %v5335_v44, 264  ;;  %v1703_v36 = vmul.f32 %v5378_v7, %v1370_v30  ;;  %v2166_v2 = vrot.slane %v2165_v16, 4  ;;  %v1964_v33 = vmax.f32 %v1836_v18, 0.0  ;;  %v1939_v22 = vmax.f32 %v1811_v41, 0.0 }
 0x1e7   : > { %v2246_v50 = vadd.f32 %v2245_v17, %v2244_v55  ;;  %v1823_v14 = vadd.f32 %v5372_v10, %v1688_v9  ;;  %v2241_v29 = vadd.f32 %v2240_v5, %v2239_v32  ;;  %v1814_v21 = vadd.f32 %v5372_v10, %v1679_v24 }
 0x1e8   : > { %v1355_v42 = vpop.permute.xlu1 %1354  ;;  %v1172_v43 = vpop.permute.xlu0 %1171  ;;  %v1838_v37 = vadd.f32 %v5372_v10, %v1703_v36  ;;  %v2167_v55 = vadd.f32 %v2166_v2, %v2165_v16  ;;  %v2161_v17 = vrot.slane %v2160_v1, 2  ;;  %v2207_v28 = vadd.f32 %v1940_v52, %v1939_v22 }
 0x1e9   : > { %v2247_v0 = vrot.slane %v2246_v50, 1  ;;  %v1951_v6 = vmax.f32 %v1823_v14, 0.0  ;;  %v1700_v45 = vmul.f32 %v5378_v7, %v1355_v42  ;;  %v1667_v34 = vmul.f32 %v5378_v7, %v1172_v43 }
 0x1ea   : > { %1519 = vbcast.lane.b32.xlu1 %v5325_v56, 256  ;;  %1611 = vbcast.lane.b32.xlu0 %v5345_v3, 264  ;;  %v1966_v59 = vmax.f32 %v1838_v37, 0.0  ;;  %v1941_v4 = vmax.f32 %v1813_v63, 0.0  ;;  %v2168_v14 = vrot.slane %v2167_v55, 2  ;;  %v2156_v37 = vrot.slane %v5411_v48, 1 }
 0x1eb   : > { %v2248_v57 = vadd.f32 %v2247_v0, %v2246_v50  ;;  %v2249_v13 = vadd.f32 %v1952_v39, %v1951_v6  ;;  %v1835_v26 = vadd.f32 %v5372_v10, %v1700_v45  ;;  %v1802_v9 = vadd.f32 %v5372_v10, %v1667_v34 }
 0x1ec   : > { %v1366_v20 = vpop.permute.xlu1 %1365  ;;  %v1249_v56 = vpop.permute.xlu0 %1248  ;;  %v1942_v50 = vmax.f32 %v1814_v21, 0.0  ;;  %v2162_v6 = vadd.f32 %v2161_v17, %v2160_v1  ;;  %v2169_v62 = vadd.f32 %v2168_v14, %v2167_v55 }
 0x1ed   : > { %v2250_v58 = vrot.slane %v2249_v13, 4  ;;  %v1702_v27 = vmul.f32 %v5378_v7, %v1366_v20  ;;  %v1963_v12 = vmax.f32 %v1835_v26, 0.0  ;;  %v2581_v15 = vsel %vm2546_vm2, %v2248_v57, %v2241_v29 }
 0x1ee   : > { %1596 = vbcast.lane.b32.xlu1 %v5335_v44, 256  ;;  %v1681_v30 = vmul.f32 %v5378_v7, %v1249_v56  ;;  %v2214_v18 = vadd.f32 %v1942_v50, %v1941_v4  ;;  %v2202_v20 = vadd.f32 %v2201_v61, %v5381_v25  ;;  %v2163_v34 = vrot.slane %v2162_v6, 1 }
 0x1ef   : > { %v2251_v35 = vadd.f32 %v2250_v58, %v2249_v13  ;;  %v1837_v47 = vadd.f32 %v5372_v10, %v1702_v27  ;;  %v2291_v8 = vadd.f32 %v1964_v33, %v1963_v12  ;;  %v2208_v27 = vrot.slane %v2207_v28, 4 }
 0x1f0   : > { %v1168_v49 = vpop.permute.xlu1 %1167  ;;  %v5414_v32 = vpop.permute.xlu0 %1303  ;;  %v1816_v0 = vadd.f32 %v5372_v10, %v1681_v30  ;;  %v2215_v22 = vrot.slane %v2214_v18, 4  ;;  %v2170_v61 = vrot.slane %v2169_v62, 1  ;;  %v2203_v30 = vrot.slane %v2202_v20, 2 }
 0x1f1   : > { %v2252_v23 = vrot.slane %v2251_v35, 2  ;;  %v1965_v44 = vmax.f32 %v1837_v47, 0.0  ;;  %v2292_v40 = vrot.slane %v2291_v8, 4  ;;  %v1666_v60 = vmul.f32 %v5378_v7, %v1168_v49 }
 0x1f2   : > { %1607 = vbcast.lane.b32.xlu1 %v5345_v3, 256  ;;  %v1930_v3 = vmax.f32 %v1802_v9, 0.0  ;;  %v1944_v1 = vmax.f32 %v1816_v0, 0.0  ;;  %v2209_v17 = vadd.f32 %v2208_v27, %v2207_v28  ;;  %v2216_v9 = vadd.f32 %v2215_v22, %v2214_v18 }
 0x1f3   : > { %v2253_v38 = vadd.f32 %v2252_v23, %v2251_v35  ;;  %v2298_v19 = vadd.f32 %v1966_v59, %v1965_v44  ;;  %v2293_v11 = vadd.f32 %v2292_v40, %v2291_v8  ;;  %v1801_v53 = vadd.f32 %v5372_v10, %v1666_v60 }
 0x1f4   : > { %v1245_v5 = vpop.permute.xlu1 %1244  ;;  %v1381_v16 = vpop.permute.xlu0 %1380  ;;  %v2197_v28 = vadd.f32 %v2196_v51, %v5357_v31 }
 0x1f5   : > { %v2254_v42 = vrot.slane %v2253_v38, 1  ;;  %v2299_v43 = vrot.slane %v2298_v19, 4  ;;  %v1680_v39 = vmul.f32 %v5378_v7, %v1245_v5  ;;  %v2294_v36 = vrot.slane %v2293_v11, 2 }
 0x1f6   : > { %v1929_v52 = vmax.f32 %v1801_v53, 0.0  ;;  %v1705_v24 = vmul.f32 %v5378_v7, %v1381_v16  ;;  %v2171_v53 = vadd.f32 %v2170_v61, %v2169_v62 }
 0x1f7   : > { %v2255_v45 = vadd.f32 %v2254_v42, %v2253_v38  ;;  %v2300_v41 = vadd.f32 %v2299_v43, %v2298_v19  ;;  %v1815_v57 = vadd.f32 %v5372_v10, %v1680_v39  ;;  %v2295_v13 = vadd.f32 %v2294_v36, %v2293_v11 }
 0x1f8   : > { %v2172_v29 = vadd.f32 %v1930_v3, %v1929_v52  ;;  %v5425_v2 = vpop.permute.xlu1 %1299  ;;  %v1260_v26 = vpop.permute.xlu0 %1259  ;;  %v1840_v55 = vadd.f32 %v5372_v10, %v1705_v24  ;;  %v2164_v38 = vadd.f32 %v2163_v34, %v2162_v6  ;;  %v2210_v36 = vrot.slane %v2209_v17, 2 }
 0x1f9   : > { %v2301_v56 = vrot.slane %v2300_v41, 2  ;;  %v1943_v58 = vmax.f32 %v1815_v57, 0.0  ;;  %v5432_v12 = vsel %vm2548_vm3, %v2255_v45, %v2581_v15  ;;  %v2296_v47 = vrot.slane %v2295_v13, 1 }
 0x1fa   : > { %v2173_v33 = vrot.slane %v2172_v29, 4  ;;  %v1683_v59 = vmul.f32 %v5378_v7, %v1260_v26  ;;  %v2157_v15 = vadd.f32 %v2156_v37, %v5411_v48  ;;  %v1968_v50 = vmax.f32 %v1840_v55, 0.0 }
 0x1fb   : > { %v2302_v63 = vadd.f32 %v2301_v56, %v2300_v41  ;;  %v2221_v35 = vadd.f32 %v1944_v1, %v1943_v58  ;;  %v2297_v19 = vadd.f32 %v2296_v47, %v2295_v13  ;;  %v2204_v45 = vadd.f32 %v2203_v30, %v2202_v20 }
 0x1fc   : > { %v2174_v21 = vadd.f32 %v2173_v33, %v2172_v29  ;;  %v1377_v8 = vpop.permute.xlu1 %1376  ;;  %v5435_v25 = vpop.permute.xlu0 %1314  ;;  %v1818_v42 = vadd.f32 %v5372_v10, %v1683_v59  ;;  %v2570_v39 = vsel %vm2552_vm5, %v2157_v15, %v5397_v46  ;;  %v2217_v41 = vrot.slane %v2216_v9, 2 }
 0x1fd   : > { %v2303_v49 = vrot.slane %v2302_v63, 1  ;;  %v2222_v23 = vrot.slane %v2221_v35, 4  ;;  %v1704_v44 = vmul.f32 %v5378_v7, %v1377_v8  ;;  %v2571_v18 = vsel %vm2554_vm6, %v2164_v38, %v2570_v39 }
 0x1fe   : > { %v2175_v40 = vrot.slane %v2174_v21, 2  ;;  %v2572_v31 = vsel %vm2556_vm7, %v2171_v53, %v2571_v18  ;;  %v1946_v29 = vmax.f32 %v1818_v42, 0.0  ;;  %v2211_v56 = vadd.f32 %v2210_v36, %v2209_v17 }
 0x1ff   : > { %v2304_v60 = vadd.f32 %v2303_v49, %v2302_v63  ;;  %v1839_v4 = vadd.f32 %v5372_v10, %v1704_v44  ;;  %v2223_v16 = vadd.f32 %v2222_v23, %v2221_v35  ;;  %v2198_v37 = vrot.slane %v2197_v28, 1 }
 0x200   : > { %v1256_v14 = vpop.permute.xlu1 %1255  ;;  %v5441_v11 = vpop.permute.xlu0 %1391  ;;  %v2176_v5 = vadd.f32 %v2175_v40, %v2174_v21  ;;  %v2205_v27 = vrot.slane %v2204_v45, 1  ;;  %v2218_v20 = vadd.f32 %v2217_v41, %v2216_v9  ;;  %v1690_v33 = vmul.f32 %v5378_v7, %v5425_v2 }
 0x201   : > { %v1967_v43 = vmax.f32 %v1839_v4, 0.0  ;;  %v1682_v48 = vmul.f32 %v5378_v7, %v1256_v14  ;;  %v2588_v6 = vsel %vm2546_vm2, %v2304_v60, %v2297_v19  ;;  %v2224_v51 = vrot.slane %v2223_v16, 2 }
 0x202   : > { %v2177_v0 = vrot.slane %v2176_v5, 1  ;;  %v1691_v63 = vmul.f32 %v5378_v7, %v5414_v32  ;;  %v2212_v55 = vrot.slane %v2211_v56, 1  ;;  %v2199_v49 = vadd.f32 %v2198_v37, %v2197_v28 }
 0x203   : > { %v2305_v3 = vadd.f32 %v1968_v50, %v1967_v43  ;;  %v1817_v52 = vadd.f32 %v5372_v10, %v1682_v48  ;;  %v2225_v35 = vadd.f32 %v2224_v51, %v2223_v16  ;;  %v2206_v23 = vadd.f32 %v2205_v27, %v2204_v45 }
 0x204   : > { %v1311_v57 = vpop.permute.xlu1 %1310  ;;  %v5453_v62 = vpop.permute.xlu0 %1325  ;;  %v2178_v13 = vadd.f32 %v2177_v0, %v2176_v5  ;;  %v2219_v59 = vrot.slane %v2218_v20, 1  ;;  %v1825_v44 = vadd.f32 %v5372_v10, %v1690_v33  ;;  %v1826_v2 = vadd.f32 %v5372_v10, %v1691_v63 }
 0x205   : > { %v2306_v24 = vrot.slane %v2305_v3, 4  ;;  %v1945_v46 = vmax.f32 %v1817_v52, 0.0  ;;  %v2226_v9 = vrot.slane %v2225_v35, 1  ;;  %v1692_v32 = vmul.f32 %v5378_v7, %v1311_v57 }
 0x206   : > { %v2573_v26 = vsel %vm2558_vm8, %v2178_v13, %v2572_v31  ;;  %v2213_v60 = vadd.f32 %v2212_v55, %v2211_v56  ;;  %v1953_v19 = vmax.f32 %v1825_v44, 0.0  ;;  %v1693_v50 = vmul.f32 %v5378_v7, %v5435_v25 }
 0x207   : > { %v2307_v1 = vadd.f32 %v2306_v24, %v2305_v3  ;;  %v2228_v58 = vadd.f32 %v1946_v29, %v1945_v46  ;;  %4084 = vmatprep.mubr.f32.mxu1 %v2573_v26  ;;  %v2220_v5 = vadd.f32 %v2219_v59, %v2218_v20  ;;  %v2575_v16 = vsel %vm2548_vm3, %v2199_v49, %v5293_v54 }
 0x208   : > { %v1388_v34 = vpop.permute.xlu1 %1387  ;;  %v5459_v22 = vpop.permute.xlu0 %1402  ;;  %v1954_v42 = vmax.f32 %v1826_v2, 0.0  ;;  %v2227_v43 = vadd.f32 %v2226_v9, %v2225_v35  ;;  %v2576_v48 = vsel %vm2550_vm4, %v2206_v23, %v2575_v16  ;;  %v1827_v28 = vadd.f32 %v5372_v10, %v1692_v32 }
 0x209   : > { %v2308_v47 = vrot.slane %v2307_v1, 2  ;;  %v2229_v21 = vrot.slane %v2228_v58, 4  ;;  %v2577_v25 = vsel %vm2552_vm5, %v2213_v60, %v2576_v48  ;;  %v1828_v52 = vadd.f32 %v5372_v10, %v1693_v50 }
 0x20a   : > { %v2256_v3 = vadd.f32 %v1954_v42, %v1953_v19  ;;  %v2578_v41 = vsel %vm2554_vm6, %v2220_v5, %v2577_v25  ;;  %v1955_v13 = vmax.f32 %v1827_v28, 0.0  ;;  %v1706_v29 = vmul.f32 %v5378_v7, %v1388_v34  ;;  %v5514_v25 = vld [vmem:[%s4898_s30 + $0x30] sm:$0xff] }
 0x20b   : > { %v2309_v8 = vadd.f32 %v2308_v47, %v2307_v1  ;;  %v2230_v61 = vadd.f32 %v2229_v21, %v2228_v58  ;;  %v2579_v57 = vsel %vm2556_vm7, %v2227_v43, %v2578_v41  ;;  %v1956_v26 = vmax.f32 %v1828_v52, 0.0  ;;  %4118 = vmatprep.mubr.msk.f32.mxu0 %vm2753_vm9, %v5514_v25 }
 0x20c   : > { %v1322_v15 = vpop.permute.xlu1 %1321  ;;  %v1447_v30 = vpop.permute.xlu0 %1446  ;;  %v2257_v46 = vrot.slane %v2256_v3, 4  ;;  %v1707_v37 = vmul.f32 %v5378_v7, %v5441_v11  ;;  %v1695_v27 = vmul.f32 %v5378_v7, %v5453_v62  ;;  %v1841_v34 = vadd.f32 %v5372_v10, %v1706_v29 }
 0x20d   : > { %v2310_v17 = vrot.slane %v2309_v8, 1  ;;  %v2231_v40 = vrot.slane %v2230_v61, 2  ;;  %v1717_v0 = vmul.f32 %v5378_v7, %v1447_v30  ;;  %v1694_v24 = vmul.f32 %v5378_v7, %v1322_v15 }
 0x20e   : > { %v2263_v20 = vadd.f32 %v1956_v26, %v1955_v13  ;;  %v2258_v47 = vadd.f32 %v2257_v46, %v2256_v3  ;;  %v1842_v49 = vadd.f32 %v5372_v10, %v1707_v37  ;;  %v1830_v11 = vadd.f32 %v5372_v10, %v1695_v27 }
 0x20f   : > { %v2311_v4 = vadd.f32 %v2310_v17, %v2309_v8  ;;  %v2232_v38 = vadd.f32 %v2231_v40, %v2230_v61  ;;  %v1852_v31 = vadd.f32 %v5372_v10, %v1717_v0  ;;  %v1829_v35 = vadd.f32 %v5372_v10, %v1694_v24 }
 0x210   : > { %v1399_v14 = vpop.permute.xlu1 %1398  ;;  %v1458_v53 = vpop.permute.xlu0 %1457  ;;  %v2264_v23 = vrot.slane %v2263_v20, 4  ;;  %v1709_v62 = vmul.f32 %v5378_v7, %v5459_v22  ;;  %v1969_v44 = vmax.f32 %v1841_v34, 0.0  ;;  %v2259_v17 = vrot.slane %v2258_v47, 2 }
 0x211   : > { %v2233_v39 = vrot.slane %v2232_v38, 1  ;;  %v5474_v36 = vsel %vm2548_vm3, %v2311_v4, %v2588_v6  ;;  %v1980_v33 = vmax.f32 %v1852_v31, 0.0  ;;  %v1708_v21 = vmul.f32 %v5378_v7, %v1399_v14 }
 0x212   : > { %v1957_v15 = vmax.f32 %v1829_v35, 0.0  ;;  %v1970_v60 = vmax.f32 %v1842_v49, 0.0  ;;  %v1958_v4 = vmax.f32 %v1830_v11, 0.0  ;;  %v2265_v19 = vadd.f32 %v2264_v23, %v2263_v20 }
 0x213   : > { %v2234_v54 = vadd.f32 %v2233_v39, %v2232_v38  ;;  %v1843_v40 = vadd.f32 %v5372_v10, %v1708_v21  ;;  %v1719_v38 = vmul.f32 %v5378_v7, %v1458_v53  ;;  %v1844_v50 = vadd.f32 %v5372_v10, %v1709_v62 }
 0x214   : > { %v1443_v18 = vpop.permute.xlu1 %1442  ;;  %v1337_v45 = vpop.permute.xlu0 %1336  ;;  %v2312_v14 = vadd.f32 %v1970_v60, %v1969_v44  ;;  %v2270_v5 = vadd.f32 %v1958_v4, %v1957_v15  ;;  %v2260_v0 = vadd.f32 %v2259_v17, %v2258_v47  ;;  %v2266_v3 = vrot.slane %v2265_v19, 2 }
 0x215   : > { %v1716_v51 = vmul.f32 %v5378_v7, %v1443_v18  ;;  %v2580_v6 = vsel %vm2558_vm8, %v2234_v54, %v2579_v57  ;;  %v1697_v30 = vmul.f32 %v5378_v7, %v1337_v45  ;;  %v1971_v43 = vmax.f32 %v1843_v40, 0.0 }
 0x216   : > { %4085 = vmatmul.mubr.f32.gmra.mrb[10].mxu1 %v2580_v6  ;;  %v1854_v39 = vadd.f32 %v5372_v10, %v1719_v38  ;;  %v1972_v52 = vmax.f32 %v1844_v50, 0.0  ;;  %v2313_v45 = vrot.slane %v2312_v14, 4  ;;  %v2271_v54 = vrot.slane %v2270_v5, 4 }
 0x217   : > { %v1851_v56 = vadd.f32 %v5372_v10, %v1716_v51  ;;  %v1832_v16 = vadd.f32 %v5372_v10, %v1697_v30  ;;  %v2261_v29 = vrot.slane %v2260_v0, 1  ;;  %v2267_v26 = vadd.f32 %v2266_v3, %v2265_v19 }
 0x218   : > { %v1454_v1 = vpop.permute.xlu1 %1453  ;;  %v1414_v58 = vpop.permute.xlu0 %1413  ;;  %v2319_v13 = vadd.f32 %v1972_v52, %v1971_v43  ;;  %v1982_v24 = vmax.f32 %v1854_v39, 0.0  ;;  %v2272_v37 = vadd.f32 %v2271_v54, %v2270_v5 }
 0x219   : > { %v1979_v63 = vmax.f32 %v1851_v56, 0.0  ;;  %v1718_v2 = vmul.f32 %v5378_v7, %v1454_v1  ;;  %v1960_v41 = vmax.f32 %v1832_v16, 0.0  ;;  %v1711_v31 = vmul.f32 %v5378_v7, %v1414_v58 }
 0x21a   : > { %v2314_v1 = vadd.f32 %v2313_v45, %v2312_v14  ;;  %v2262_v58 = vadd.f32 %v2261_v29, %v2260_v0  ;;  %v2273_v62 = vrot.slane %v2272_v37, 2 }
 0x21b   : > { %v5493_v55 = vadd.f32 %v1980_v33, %v1979_v63  ;;  %v1853_v42 = vadd.f32 %v5372_v10, %v1718_v2  ;;  %v2320_v33 = vrot.slane %v2319_v13, 4  ;;  %v1846_v63 = vadd.f32 %v5372_v10, %v1711_v31 }
 0x21c   : > { %v1333_v8 = vpop.permute.xlu1 %1332  ;;  %v1469_v61 = vpop.permute.xlu0 %1468  ;;  %v2315_v23 = vrot.slane %v2314_v1, 2  ;;  %v2583_v4 = vsel %vm2550_vm4, %v2262_v58, %v5432_v12  ;;  %v2274_v5 = vadd.f32 %v2273_v62, %v2272_v37 }
 0x21d   : > { %v1696_v59 = vmul.f32 %v5378_v7, %v1333_v8  ;;  %v1981_v57 = vmax.f32 %v1853_v42, 0.0  ;;  %v1721_v21 = vmul.f32 %v5378_v7, %v1469_v61  ;;  %v2268_v8 = vrot.slane %v2267_v26, 1 }
 0x21e   : > { %v2321_v15 = vadd.f32 %v2320_v33, %v2319_v13  ;;  %v2348_v30 = vrot.slane %v5493_v55, 4  ;;  %v1974_v2 = vmax.f32 %v1846_v63, 0.0  ;;  %v2316_v14 = vadd.f32 %v2315_v23, %v2314_v1 }
 0x21f   : > { %v1831_v22 = vadd.f32 %v5372_v10, %v1696_v59  ;;  %v2354_v27 = vadd.f32 %v1982_v24, %v1981_v57  ;;  %v1856_v60 = vadd.f32 %v5372_v10, %v1721_v21  ;;  %v2269_v38 = vadd.f32 %v2268_v8, %v2267_v26 }
 0x220   : > { %v1410_v9 = vpop.permute.xlu1 %1409  ;;  %v5503_v32 = vpop.permute.xlu0 %1534  ;;  %v2322_v43 = vrot.slane %v2321_v15, 2  ;;  %v2275_v29 = vrot.slane %v2274_v5, 1 }
 0x221   : > { %v1959_v53 = vmax.f32 %v1831_v22, 0.0  ;;  %v1710_v18 = vmul.f32 %v5378_v7, %v1410_v9  ;;  %v2355_v59 = vrot.slane %v2354_v27, 4  ;;  %v1984_v52 = vmax.f32 %v1856_v60, 0.0 }
 0x222   : > { %v2584_v1 = vsel %vm2552_vm5, %v2269_v38, %v2583_v4  ;;  %v2323_v37 = vadd.f32 %v2322_v43, %v2321_v15  ;;  %v2276_v15 = vadd.f32 %v2275_v29, %v2274_v5 }
 0x223   : > { %v2277_v46 = vadd.f32 %v1960_v41, %v1959_v53  ;;  %v1845_v56 = vadd.f32 %v5372_v10, %v1710_v18  ;;  %v2356_v16 = vadd.f32 %v2355_v59, %v2354_v27  ;;  %v1733_v41 = vmul.f32 %v5378_v7, %v5503_v32 }
 0x224   : > { %v1465_v48 = vpop.permute.xlu1 %1464  ;;  %v5510_v28 = vpop.permute.xlu0 %1545 }
 0x225   : > { %v1720_v20 = vmul.f32 %v5378_v7, %v1465_v48  ;;  %v2278_v47 = vrot.slane %v2277_v46, 4  ;;  %v1973_v49 = vmax.f32 %v1845_v56, 0.0  ;;  %v2349_v48 = vadd.f32 %v2348_v30, %v5493_v55 }
 0x226   : > { %v2317_v55 = vrot.slane %v2316_v14, 1  ;;  %v2357_v31 = vrot.slane %v2356_v16, 2  ;;  %v2324_v30 = vrot.slane %v2323_v37, 1 }
 0x227   : > { %v1855_v44 = vadd.f32 %v5372_v10, %v1720_v20  ;;  %v2279_v9 = vadd.f32 %v2278_v47, %v2277_v46  ;;  %v2326_v22 = vadd.f32 %v1974_v2, %v1973_v49  ;;  %v2350_v32 = vrot.slane %v2349_v48, 2 }
 0x228   : > { %v1531_v51 = vpop.permute.xlu1 %1530  ;;  %v1348_v6 = vpop.permute.xlu0 %1347  ;;  %v2318_v47 = vadd.f32 %v2317_v55, %v2316_v14  ;;  %v2358_v21 = vadd.f32 %v2357_v31, %v2356_v16 }
 0x229   : > { %v1699_v11 = vmul.f32 %v5378_v7, %v1348_v6  ;;  %v1983_v42 = vmax.f32 %v1855_v44, 0.0  ;;  %v1732_v0 = vmul.f32 %v5378_v7, %v1531_v51  ;;  %v2280_v12 = vrot.slane %v2279_v9, 2 }
 0x22a   : > { %v2327_v54 = vrot.slane %v2326_v22, 4  ;;  %v2351_v60 = vadd.f32 %v2350_v32, %v2349_v48 }
 0x22b   : > { %v1834_v19 = vadd.f32 %v5372_v10, %v1699_v11  ;;  %v2361_v51 = vadd.f32 %v1984_v52, %v1983_v42  ;;  %v1867_v24 = vadd.f32 %v5372_v10, %v1732_v0  ;;  %v2281_v27 = vadd.f32 %v2280_v12, %v2279_v9 }
 0x22c   : > { %v5523_v34 = vpop.permute.xlu1 %1541  ;;  %v1425_v35 = vpop.permute.xlu0 %1424  ;;  %v2328_v63 = vadd.f32 %v2327_v54, %v2326_v22  ;;  %v2359_v22 = vrot.slane %v2358_v21, 1  ;;  %v2585_v0 = vsel %vm2554_vm6, %v2276_v15, %v2584_v1  ;;  %v2325_v52 = vadd.f32 %v2324_v30, %v2323_v37 }
 0x22d   : > { %v1713_v61 = vmul.f32 %v5378_v7, %v1425_v35  ;;  %v1962_v57 = vmax.f32 %v1834_v19, 0.0  ;;  %v1868_v35 = vadd.f32 %v5372_v10, %v1733_v41  ;;  %v2362_v8 = vrot.slane %v2361_v51, 4 }
 0x22e   : > { %v1995_v11 = vmax.f32 %v1867_v24, 0.0  ;;  %v1734_v23 = vmul.f32 %v5378_v7, %v5523_v34  ;;  %v2282_v9 = vrot.slane %v2281_v27, 1  ;;  %v2590_v34 = vsel %vm2550_vm4, %v2318_v47, %v5474_v36 }
 0x22f   : > { %v1848_v18 = vadd.f32 %v5372_v10, %v1713_v61  ;;  %v2329_v61 = vrot.slane %v2328_v63, 2  ;;  %v1996_v4 = vmax.f32 %v1868_v35, 0.0  ;;  %v2363_v19 = vadd.f32 %v2362_v8, %v2361_v51 }
 0x230   : > { %v1344_v17 = vpop.permute.xlu1 %1343  ;;  %v5529_v40 = vpop.permute.xlu0 %1479  ;;  %v1869_v5 = vadd.f32 %v5372_v10, %v1734_v23  ;;  %v2283_v12 = vadd.f32 %v2282_v9, %v2281_v27  ;;  %v2360_v54 = vadd.f32 %v2359_v22, %v2358_v21 }
 0x231   : > { %v1698_v50 = vmul.f32 %v5378_v7, %v1344_v17  ;;  %v1976_v20 = vmax.f32 %v1848_v18, 0.0  ;;  %v2403_v14 = vadd.f32 %v1996_v4, %v1995_v11  ;;  %v2352_v18 = vrot.slane %v2351_v60, 1 }
 0x232   : > { %v2364_v36 = vrot.slane %v2363_v19, 2  ;;  %v1997_v55 = vmax.f32 %v1869_v5, 0.0  ;;  %v2586_v1 = vsel %vm2556_vm7, %v2283_v12, %v2585_v0  ;;  %v2591_v11 = vsel %vm2552_vm5, %v2325_v52, %v2590_v34 }
 0x233   : > { %v1833_v39 = vadd.f32 %v5372_v10, %v1698_v50  ;;  %v1735_v50 = vmul.f32 %v5378_v7, %v5510_v28  ;;  %v2330_v28 = vadd.f32 %v2329_v61, %v2328_v63  ;;  %v2353_v37 = vadd.f32 %v2352_v18, %v2351_v60 }
 0x234   : > { %v1421_v53 = vpop.permute.xlu1 %1420  ;;  %v5540_v3 = vpop.permute.xlu0 %1556  ;;  %v5570_v32 = vadd.f32 %v2364_v36, %v2363_v19 }
 0x235   : > { %v1712_v45 = vmul.f32 %v5378_v7, %v1421_v53  ;;  %v1961_v13 = vmax.f32 %v1833_v39, 0.0  ;;  %v1870_v41 = vadd.f32 %v5372_v10, %v1735_v50  ;;  %v2331_v27 = vrot.slane %v2330_v28, 1 }
 0x236   : > { %v5581_v15 = vsel %vm2546_vm2, %v2360_v54, %v2353_v37  ;;  %v1737_v22 = vmul.f32 %v5378_v7, %v5540_v3 }
 0x237   : > { %v1847_v6 = vadd.f32 %v5372_v10, %v1712_v45  ;;  %v2284_v46 = vadd.f32 %v1962_v57, %v1961_v13  ;;  %v2404_v13 = vrot.slane %v2403_v14, 4  ;;  %v1998_v63 = vmax.f32 %v1870_v41, 0.0 }
 0x238   : > { %v1476_v26 = vpop.permute.xlu1 %1475  ;;  %v1436_v56 = vpop.permute.xlu0 %1435  ;;  %v2332_v9 = vadd.f32 %v2331_v27, %v2330_v28  ;;  %v1872_v28 = vadd.f32 %v5372_v10, %v1737_v22 }
 0x239   : > { %v1975_v33 = vmax.f32 %v1847_v6, 0.0  ;;  %v2285_v58 = vrot.slane %v2284_v46, 4  ;;  %v1715_v17 = vmul.f32 %v5378_v7, %v1436_v56  ;;  %v1722_v31 = vmul.f32 %v5378_v7, %v1476_v26 }
 0x23a   : > { %v2000_v27 = vmax.f32 %v1872_v28, 0.0 }
 0x23b   : > { %v2333_v49 = vadd.f32 %v1976_v20, %v1975_v33  ;;  %v2286_v62 = vadd.f32 %v2285_v58, %v2284_v46  ;;  %v1850_v39 = vadd.f32 %v5372_v10, %v1715_v17  ;;  %v1723_v20 = vmul.f32 %v5378_v7, %v5529_v40 }
 0x23c   : > { %v5552_v59 = vpop.permute.xlu1 %1552  ;;  %v1491_v44 = vpop.permute.xlu0 %1490  ;;  %v5573_v58 = vadd.f32 %v2404_v13, %v2403_v14  ;;  %v1857_v47 = vadd.f32 %v5372_v10, %v1722_v31  ;;  %v5578_v40 = vadd.f32 %v1998_v63, %v1997_v55 }
 0x23d   : > { %v2334_v2 = vrot.slane %v2333_v49, 4  ;;  %v2287_v38 = vrot.slane %v2286_v62, 2  ;;  %v1978_v46 = vmax.f32 %v1850_v39, 0.0  ;;  %v1725_v21 = vmul.f32 %v5378_v7, %v1491_v44 }
 0x23e   : > { %v1858_v30 = vadd.f32 %v5372_v10, %v1723_v20  ;;  %v2366_v44 = vrot.slane %v5570_v32, 1  ;;  %v1985_v19 = vmax.f32 %v1857_v47, 0.0  ;;  %v2411_v0 = vrot.slane %v5578_v40, 4 }
 0x23f   : > { %v2288_v43 = vadd.f32 %v2287_v38, %v2286_v62  ;;  %v2335_v48 = vadd.f32 %v2334_v2, %v2333_v49  ;;  %v1736_v2 = vmul.f32 %v5378_v7, %v5552_v59  ;;  %v2406_v38 = vrot.slane %v5573_v58, 2 }
 0x240   : > { %v1432_v16 = vpop.permute.xlu1 %1431  ;;  %v1568_v42 = vpop.permute.xlu0 %1567  ;;  %v1860_v50 = vadd.f32 %v5372_v10, %v1725_v21 }
 0x241   : > { %v1714_v53 = vmul.f32 %v5378_v7, %v1432_v16  ;;  %v2289_v45 = vrot.slane %v2288_v43, 1  ;;  %v2336_v24 = vrot.slane %v2335_v48, 2  ;;  %v1739_v5 = vmul.f32 %v5378_v7, %v1568_v42 }
 0x242   : > { %v1871_v39 = vadd.f32 %v5372_v10, %v1736_v2  ;;  %v1988_v42 = vmax.f32 %v1860_v50, 0.0  ;;  %v5615_v2 = vadd.f32 %v2366_v44, %v5570_v32 }
 0x243   : > { %v1849_v57 = vadd.f32 %v5372_v10, %v1714_v53  ;;  %v2290_v29 = vadd.f32 %v2289_v45, %v2288_v43  ;;  %v2337_v23 = vadd.f32 %v2336_v24, %v2335_v48  ;;  %v1986_v48 = vmax.f32 %v1858_v30, 0.0 }
 0x244   : > { %v1487_v51 = vpop.permute.xlu1 %1486  ;;  %v1502_v6 = vpop.permute.xlu0 %1501  ;;  %v2592_v24 = vsel %vm2554_vm6, %v2332_v9, %v2591_v11 }
 0x245   : > { %v1977_v56 = vmax.f32 %v1849_v57, 0.0  ;;  %v2587_v33 = vsel %vm2558_vm8, %v2290_v29, %v2586_v1  ;;  %v1724_v26 = vmul.f32 %v5378_v7, %v1487_v51  ;;  %v1727_v17 = vmul.f32 %v5378_v7, %v1502_v6 }
 0x246   : > { %4087 = vmatprep.mubr.f32.mxu1 %v2587_v33  ;;  %v2338_v43 = vrot.slane %v2337_v23, 1  ;;  %v2368_v45 = vadd.f32 %v1986_v48, %v1985_v19  ;;  %v1874_v57 = vadd.f32 %v5372_v10, %v1739_v5 }
 0x247   : > { %v2340_v35 = vadd.f32 %v1978_v46, %v1977_v56  ;;  %v1859_v61 = vadd.f32 %v5372_v10, %v1724_v26  ;;  %v1862_v53 = vadd.f32 %v5372_v10, %v1727_v17  ;;  %v1999_v46 = vmax.f32 %v1871_v39, 0.0 }
 0x248   : > { %v1564_v8 = vpop.permute.xlu1 %1563  ;;  %v1579_v49 = vpop.permute.xlu0 %1578  ;;  %v2339_v31 = vadd.f32 %v2338_v43, %v2337_v23  ;;  %v2369_v47 = vrot.slane %v2368_v45, 4  ;;  %v2002_v21 = vmax.f32 %v1874_v57, 0.0 }
 0x249   : > { %v2341_v62 = vrot.slane %v2340_v35, 4  ;;  %v1738_v4 = vmul.f32 %v5378_v7, %v1564_v8  ;;  %v1987_v12 = vmax.f32 %v1859_v61, 0.0  ;;  %v1741_v54 = vmul.f32 %v5378_v7, %v1579_v49 }
 0x24a   : > { %v1990_v51 = vmax.f32 %v1862_v53, 0.0  ;;  %v2593_v49 = vsel %vm2556_vm7, %v2339_v31, %v2592_v24  ;;  %v2417_v17 = vadd.f32 %v2000_v27, %v1999_v46  ;;  %v5618_v61 = vadd.f32 %v2406_v38, %v5573_v58  ;;  %v4499_v46 = vld [vmem:[%s5900_s11] ss:$0 sm:$0xff] }
 0x24b   : > { %v2342_v60 = vadd.f32 %v2341_v62, %v2340_v35  ;;  %v1873_v3 = vadd.f32 %v5372_v10, %v1738_v4  ;;  %v2375_v56 = vadd.f32 %v1988_v42, %v1987_v12  ;;  %v1876_v20 = vadd.f32 %v5372_v10, %v1741_v54 }
 0x24c   : > { %v1498_v34 = vpop.permute.xlu1 %1497  ;;  %v1513_v59 = vpop.permute.xlu0 %1512  ;;  %v2418_v58 = vrot.slane %v2417_v17, 4  ;;  %v2408_v12 = vrot.slane %v5618_v61, 1 }
 0x24d   : > { %v2343_v14 = vrot.slane %v2342_v60, 2  ;;  %v1726_v16 = vmul.f32 %v5378_v7, %v1498_v34  ;;  %v1729_v6 = vmul.f32 %v5378_v7, %v1513_v59  ;;  %v2001_v1 = vmax.f32 %v1873_v3, 0.0 }
 0x24e   : > { %v2376_v9 = vrot.slane %v2375_v56, 4  ;;  %v2004_v4 = vmax.f32 %v1876_v20, 0.0  ;;  %v2412_v59 = vadd.f32 %v2411_v0, %v5578_v40 }
 0x24f   : > { %v1861_v52 = vadd.f32 %v5372_v10, %v1726_v16  ;;  %v2344_v18 = vadd.f32 %v2343_v14, %v2342_v60  ;;  %v1864_v11 = vadd.f32 %v5372_v10, %v1729_v6  ;;  %v2424_v60 = vadd.f32 %v2002_v21, %v2001_v1 }
 0x250   : > { %v1575_v36 = vpop.permute.xlu1 %1574  ;;  %v1590_v41 = vpop.permute.xlu0 %1589  ;;  %v2370_v14 = vadd.f32 %v2369_v47, %v2368_v45  ;;  %v2377_v38 = vadd.f32 %v2376_v9, %v2375_v56 }
 0x251   : > { %v1989_v13 = vmax.f32 %v1861_v52, 0.0  ;;  %v1740_v55 = vmul.f32 %v5378_v7, %v1575_v36  ;;  %v2345_v29 = vrot.slane %v2344_v18, 1  ;;  %v1743_v8 = vmul.f32 %v5378_v7, %v1590_v41 }
 0x252   : > { %v1992_v44 = vmax.f32 %v1864_v11, 0.0  ;;  %v2425_v39 = vrot.slane %v2424_v60, 4  ;;  %v2371_v28 = vrot.slane %v2370_v14, 2  ;;  %v2378_v31 = vrot.slane %v2377_v38, 2 }
 0x253   : > { %v1875_v37 = vadd.f32 %v5372_v10, %v1740_v55  ;;  %v2382_v33 = vadd.f32 %v1990_v51, %v1989_v13  ;;  %v2346_v26 = vadd.f32 %v2345_v29, %v2344_v18  ;;  %v1878_v5 = vadd.f32 %v5372_v10, %v1743_v8 }
 0x254   : > { %v1509_v63 = vpop.permute.xlu1 %1508  ;;  %v1524_v35 = vpop.permute.xlu0 %1523  ;;  %v2413_v18 = vrot.slane %v2412_v59, 2  ;;  %v2419_v55 = vadd.f32 %v2418_v58, %v2417_v17  ;;  %v2426_v51 = vadd.f32 %v2425_v39, %v2424_v60  ;;  %v2372_v27 = vadd.f32 %v2371_v28, %v2370_v14 }
 0x255   : > { %v2003_v23 = vmax.f32 %v1875_v37, 0.0  ;;  %v1728_v62 = vmul.f32 %v5378_v7, %v1509_v63  ;;  %v2594_v30 = vsel %vm2558_vm8, %v2346_v26, %v2593_v49  ;;  %v2383_v22 = vrot.slane %v2382_v33, 4 }
 0x256   : > { %4088 = vmatmul.mubr.f32.gmra.mrb[12].mxu1 %v2594_v30  ;;  %v1731_v48 = vmul.f32 %v5378_v7, %v1524_v35  ;;  %v2006_v45 = vmax.f32 %v1878_v5, 0.0  ;;  %v2420_v21 = vrot.slane %v2419_v55, 2  ;;  %v2379_v8 = vadd.f32 %v2378_v31, %v2377_v38 }
 0x257   : > { %v1863_v19 = vadd.f32 %v5372_v10, %v1728_v62  ;;  %v2431_v16 = vadd.f32 %v2004_v4, %v2003_v23  ;;  %v2384_v3 = vadd.f32 %v2383_v22, %v2382_v33  ;;  %v2427_v23 = vrot.slane %v2426_v51, 2 }
 0x258   : > { %v1586_v50 = vpop.permute.xlu1 %1585  ;;  %v1601_v34 = vpop.permute.xlu0 %1600  ;;  %v1866_v41 = vadd.f32 %v5372_v10, %v1731_v48  ;;  %v2421_v48 = vadd.f32 %v2420_v21, %v2419_v55  ;;  %v2596_v55 = vsel %vm2548_vm3, %v5615_v2, %v5581_v15 }
 0x259   : > { %v1742_v32 = vmul.f32 %v5378_v7, %v1586_v50  ;;  %v1991_v43 = vmax.f32 %v1863_v19, 0.0  ;;  %v1745_v40 = vmul.f32 %v5378_v7, %v1601_v34  ;;  %v2432_v54 = vrot.slane %v2431_v16, 4 }
 0x25a   : > { %v2385_v29 = vrot.slane %v2384_v3, 2  ;;  %v1994_v26 = vmax.f32 %v1866_v41, 0.0  ;;  %v2414_v50 = vadd.f32 %v2413_v18, %v2412_v59  ;;  %v2373_v34 = vrot.slane %v2372_v27, 1 }
 0x25b   : > { %v1877_v53 = vadd.f32 %v5372_v10, %v1742_v32  ;;  %v2389_v52 = vadd.f32 %v1992_v44, %v1991_v43  ;;  %v1880_v56 = vadd.f32 %v4499_v46, %v1745_v40  ;;  %v4500_v10 = vld [vmem:[%s5899_s10] ss:$0 sm:$0xff]  ;;  %v2433_v63 = vadd.f32 %v2432_v54, %v2431_v16 }
 0x25c   : > { %v1520_v0 = vpop.permute.xlu1 %1519  ;;  %v1612_v13 = vpop.permute.xlu0 %1611  ;;  %v2386_v62 = vadd.f32 %v2385_v29, %v2384_v3  ;;  %v2380_v32 = vrot.slane %v2379_v8, 1  ;;  %v2428_v58 = vadd.f32 %v2427_v23, %v2426_v51  ;;  %v2374_v28 = vadd.f32 %v2373_v34, %v2372_v27 }
 0x25d   : > { %v2005_v42 = vmax.f32 %v1877_v53, 0.0  ;;  %v2390_v36 = vrot.slane %v2389_v52, 4  ;;  %v1730_v57 = vmul.f32 %v5378_v7, %v1520_v0  ;;  %v1747_v7 = vmul.f32 %v4500_v10, %v1612_v13 }
 0x25e   : > { %v2008_v30 = vmax.f32 %v1880_v56, 0.0  ;;  %v2434_v14 = vrot.slane %v2433_v63, 2  ;;  %v2387_v38 = vrot.slane %v2386_v62, 1  ;;  %v2415_v0 = vrot.slane %v2414_v50, 1 }
 0x25f   : > { %v2438_v6 = vadd.f32 %v2006_v45, %v2005_v42  ;;  %v2391_v24 = vadd.f32 %v2390_v36, %v2389_v52  ;;  %v1865_v1 = vadd.f32 %v4499_v46, %v1730_v57  ;;  %v1882_v4 = vadd.f32 %v4499_v46, %v1747_v7 }
 0x260   : > { %v1597_v37 = vpop.permute.xlu1 %1596  ;;  %v2435_v45 = vadd.f32 %v2434_v14, %v2433_v63  ;;  %v2381_v59 = vadd.f32 %v2380_v32, %v2379_v8  ;;  %v2422_v41 = vrot.slane %v2421_v48, 1  ;;  %v2388_v57 = vadd.f32 %v2387_v38, %v2386_v62  ;;  %v3824_v14 = vld [vmem:[%s5898_s9] ss:$0 sm:$0xff] }
 0x261   : > { %v2439_v20 = vrot.slane %v2438_v6, 4  ;;  %v1744_v33 = vmul.f32 %v4500_v10, %v1597_v37  ;;  %v2392_v35 = vrot.slane %v2391_v24, 2  ;;  %v1993_v47 = vmax.f32 %v1865_v1, 0.0 }
 0x262   : > { %v2010_v53 = vmax.f32 %v1882_v4, 0.0  ;;  %v2429_v31 = vrot.slane %v2428_v58, 1  ;;  %v2597_v1 = vsel %vm2550_vm4, %v2374_v28, %v2596_v55  ;;  %v2409_v7 = vadd.f32 %v2408_v12, %v5618_v61  ;;  %v5699_v55 = vld [vmem:[%s4898_s30 + $0x20] sm:$0xff] }
 0x263   : > { %v2440_v49 = vadd.f32 %v2439_v20, %v2438_v6  ;;  %v1879_v11 = vadd.f32 %v4499_v46, %v1744_v33  ;;  %v2396_v17 = vadd.f32 %v1994_v26, %v1993_v47  ;;  %v2393_v60 = vadd.f32 %v2392_v35, %v2391_v24 }
 0x264   : > { %v1608_v9 = vpop.permute.xlu1 %1607  ;;  %v2416_v24 = vadd.f32 %v2415_v0, %v2414_v50  ;;  %v2423_v33 = vadd.f32 %v2422_v41, %v2421_v48  ;;  %v2430_v63 = vadd.f32 %v2429_v31, %v2428_v58  ;;  %v3821_v50 = vld [vmem:[%s5894_s5] ss:$0 sm:$0xff] }
 0x265   : > { %v2007_v22 = vmax.f32 %v1879_v11, 0.0  ;;  %v1746_v19 = vmul.f32 %v4500_v10, %v1608_v9  ;;  %v2397_v5 = vrot.slane %v2396_v17, 4  ;;  %v2441_v44 = vrot.slane %v2440_v49, 2 }
 0x266   : > { %v2394_v40 = vrot.slane %v2393_v60, 1  ;;  %v2598_v10 = vsel %vm2552_vm5, %v2381_v59, %v2597_v1  ;;  %v2602_v23 = vsel %vm2546_vm2, %v2416_v24, %v2409_v7  ;;  %v4403_v0 = vadd.f32 %v3824_v14, %v3821_v50 }
 0x267   : > { %v2445_v16 = vadd.f32 %v2008_v30, %v2007_v22  ;;  %v1881_v43 = vadd.f32 %v4499_v46, %v1746_v19  ;;  %v2398_v39 = vadd.f32 %v2397_v5, %v2396_v17  ;;  %v2442_v18 = vadd.f32 %v2441_v44, %v2440_v49  ;;  %v5655_v19 = vld [vmem:[%s4898_s30] sm:$0xff] }
 0x268   : > { %v2395_v29 = vadd.f32 %v2394_v40, %v2393_v60  ;;  %v2436_v46 = vrot.slane %v2435_v45, 1  ;;  %v2599_v2 = vsel %vm2554_vm6, %v2388_v57, %v2598_v10  ;;  %v2603_v61 = vsel %vm2548_vm3, %v2423_v33, %v2602_v23  ;;  %v4503_v40 = vld [vmem:[%s4898_s30 + $0x10] sm:$0xff] }
 0x269   : > { %v2446_v3 = vrot.slane %v2445_v16, 4  ;;  %v2009_v52 = vmax.f32 %v1881_v43, 0.0  ;;  %v2399_v42 = vrot.slane %v2398_v39, 2  ;;  %v2443_v37 = vrot.slane %v2442_v18, 1 }
 0x26a   : > { %v2600_v26 = vsel %vm2556_vm7, %v2395_v29, %v2599_v2  ;;  %v2437_v21 = vadd.f32 %v2436_v46, %v2435_v45  ;;  %v2604_v30 = vsel %vm2550_vm4, %v2430_v63, %v2603_v61  ;;  %v3083_v61 = vld [vmem:[#allocation5 + $0x28] sm:$0xff] }
 0x26b   : > { %v2447_v54 = vadd.f32 %v2446_v3, %v2445_v16  ;;  %v2452_v36 = vadd.f32 %v2010_v53, %v2009_v52  ;;  %v2400_v13 = vadd.f32 %v2399_v42, %v2398_v39  ;;  %v2444_v49 = vadd.f32 %v2443_v37, %v2442_v18  ;;  %v5668_v16 = vld [vmem:[%s5896_s7] ss:$0 sm:$0xff]  ;;  %v5679_v52 = vld [vmem:[%s4898_s30 + $0x8] sm:$0xff] }
 0x26c   : > { %v2605_v17 = vsel %vm2552_vm5, %v2437_v21, %v2604_v30 }
 0x26d   : > { %v2448_v51 = vrot.slane %v2447_v54, 2  ;;  %v2453_v6 = vrot.slane %v2452_v36, 4  ;;  %v2401_v56 = vrot.slane %v2400_v13, 1  ;;  %v2606_v60 = vsel %vm2554_vm6, %v2444_v49, %v2605_v17  ;;  %v3080_v49 = vld [vmem:[#allocation5 + $0x10] sm:$0xff] }
 0x26e   : > { %v3084_v17 = vld [vmem:[#allocation5 + $0x30] sm:$0xff] }
 0x26f   : > { %v2449_v27 = vadd.f32 %v2448_v51, %v2447_v54  ;;  %v2454_v20 = vadd.f32 %v2453_v6, %v2452_v36  ;;  %v2402_v15 = vadd.f32 %v2401_v56, %v2400_v13  ;;  %v5694_v13 = vld [vmem:[%s4898_s30 + $0x18] sm:$0xff] }
 0x271   : > { %v2455_v35 = vrot.slane %v2454_v20, 2  ;;  %v2450_v47 = vrot.slane %v2449_v27, 1  ;;  %v2601_v8 = vsel %vm2558_vm8, %v2402_v15, %v2600_v26  ;;  %v3079_v26 = vld [vmem:[#allocation5 + $0x8] sm:$0xff] }
 0x272   : > { %4090 = vmatprep.mubr.f32.mxu1 %v2601_v8 }
 0x273   : > { %v2456_v11 = vadd.f32 %v2455_v35, %v2454_v20  ;;  %v2451_v62 = vadd.f32 %v2450_v47, %v2449_v27  ;;  %v5712_v27 = vld [vmem:[%s4898_s30 + $0x28] sm:$0xff]  ;;  %v3078_v35 = vld [vmem:[#allocation5] sm:$0xff] }
 0x274   : > { %v5725_v8 = vpack.c.bf16 %v3079_v26, %v3078_v35 }
 0x275   : > { %v2457_v12 = vrot.slane %v2456_v11, 1  ;;  %v2607_v4 = vsel %vm2556_vm7, %v2451_v62, %v2606_v60  ;;  %v3082_v62 = vld [vmem:[#allocation5 + $0x20] sm:$0xff] }
 0x276   : > { %v5737_v30 = vpack.c.bf16 %v3083_v61, %v3082_v62 }
 0x277   : > { %v2458_v9 = vadd.f32 %v2457_v12, %v2456_v11  ;;  %v3081_v11 = vld [vmem:[#allocation5 + $0x18] sm:$0xff] }
 0x278   : > { %v5728_v23 = vpack.c.bf16 %v3081_v11, %v3080_v49  ;;  %v5731_v12 = vld [vmem:[%s4898_s30 + $0x38] sm:$0xff]  ;;  %s469_s30 = sand.u32 1, %s4654_s22  }
 0x279   : > { %v2608_v22 = vsel %vm2558_vm8, %v2458_v9, %v2607_v4  ;;  %v3085_v9 = vld [vmem:[#allocation5 + $0x38] sm:$0xff]  ;;  %v3086_v4 = vld [vmem:[#allocation5 + $0x40] sm:$0xff]  ;;  %s3804_s17 = sshll.u32 %s469_s30, 6  ;;  %s5848_s24 = scalar_lea.sflag [#allocation4], %s469_s30 }
 0x27a   : > { %4091 = vmatmul.mubr.f32.gmra.mrb[14].mxu1 %v2608_v22  ;;  %v5741_v60 = vpack.c.bf16 %v3085_v9, %v3084_v17  ;;  %v3087_v22 = vld [vmem:[#allocation5 + $0x48] sm:$0xff]  ;;  %s5815_s20 = scalar_lea.vmem [#allocation8], %s3804_s17 }
 0x27b   : > { %4097 = vmatprep.mubr.msk.f32.mxu1 %vm2753_vm9, %v5655_v19  ;;  %s3689_s14 = sshll.u32 %s5815_s20, 4  ;;  %s5837_s14 = int_to_ptr.vmem [resolvable:$true] %s3689_s14 }
 0x27c   : > { %s4592_s25 = scalar_lea.vmem %s5837_s14, 1024  ;;  %p4599_p13 = scmp.lt.s32.totalorder %s5837_s14, %s4597_s16 }
 0x27d   : > { %p4593_p12 = scmp.ne.s32.totalorder %s5837_s14, %s4592_s25  ;;  %p4600_p1 = scmp.lt.s32.totalorder %s4598_s19, %s4592_s25 }
 0x27f   : > { %p4594_p8 = pnand %p4593_p12, %p5935_p7  ;;  %p4601_p6 = por %p4600_p1, %p4599_p13 }
 0x281   : > { %p4595_p11 = pneg %p4594_p8 }
 0x283   : > { %p4602_p9 = pnand %p4601_p6, %p4595_p11 }
 0x296   : > { %v4083_v34 = vpop.f32.mrb[8].mxu1 }
 0x297   : > { %v4397_v5 = vadd.f32 %v4083_v34, %v3821_v50  ;;  %v2683_v32 = vpop.f32.mrb[9].mxu1  ;;  %v3088_v34 = vld [vmem:[#allocation5 + $0x50] sm:$0xff] }
 0x298   : > { %v4399_v44 = vadd.f32 %v3821_v50, %v2683_v32  ;;  %v5745_v50 = vpack.c.bf16 %v3087_v22, %v3086_v4  ;;  %v3090_v32 = vld [vmem:[#allocation5 + $0x60] sm:$0xff] }
 0x299   : > { %v5670_v43 = vadd.f32 %v4397_v5, %v3824_v14 }
 0x29a   : > { %v5672_v48 = vadd.f32 %v4399_v44, %v3824_v14  ;;  %v3089_v14 = vld [vmem:[#allocation5 + $0x58] sm:$0xff]  ;;  %v3091_v44 = vld [vmem:[#allocation5 + $0x68] sm:$0xff] }
 0x29b   : > { %v2738_v58 = vadd.f32 %v5670_v43, %v5668_v16  ;;  %v5749_v5 = vpack.c.bf16 %v3089_v14, %v3088_v34 }
 0x29c   : > { %v2737_v38 = vadd.f32 %v5672_v48, %v5668_v16 }
 0x29d   : > { %v2746_v39 = vmax.f32 %v2738_v58, 0.0  ;;  %v5753_v58 = vpack.c.bf16 %v3091_v44, %v3090_v32 }
 0x29e   : > { %v2745_v53 = vmax.f32 %v2737_v38, 0.0  ;;  %v3092_v38 = vld [vmem:[#allocation5 + $0x70] sm:$0xff] }
 0x2a0   : > { %v4301_v3 = vpack.c.bf16 %v2746_v39, %v2745_v53  ;;  %v3093_v39 = vld [vmem:[#allocation5 + $0x78] sm:$0xff] }
 0x2a1   : > { %v5757_v53 = vpack.c.bf16 %v3093_v39, %v3092_v38 }
 0x2a2   : > { %4302 = vmatprep.subr.bf16.mxu1 %v4301_v3 }
 0x2a3   : > { %4304 = vmatpush3.bf16.msra.mxu1 %v4301_v3 }
 0x2a6   : > { %4098 = vmatmul.mubr.msk.f32.vlgmr.msra.gmra.mrb[16].mxu1 %vm2753_vm9, %v5679_v52 }
 0x2a7   : > { %4104 = vmatprep.mubr.msk.f32.mxu1 %vm2753_vm9, %v4503_v40 }
 0x2e9   : > { %v4086_v28 = vpop.f32.mrb[10].mxu1 }
 0x2ea   : > { %v5685_v45 = vadd.f32 %v4403_v0, %v4086_v28  ;;  %v2693_v42 = vpop.f32.mrb[11].mxu1 }
 0x2eb   : > { %v5687_v59 = vadd.f32 %v4403_v0, %v2693_v42 }
 0x2ec   : > { %v2740_v18 = vadd.f32 %v5685_v45, %v5668_v16 }
 0x2ed   : > { %v2739_v54 = vadd.f32 %v5687_v59, %v5668_v16 }
 0x2ee   : > { %v2748_v36 = vmax.f32 %v2740_v18, 0.0 }
 0x2ef   : > { %v2747_v41 = vmax.f32 %v2739_v54, 0.0 }
 0x2f1   : > { %v4305_v57 = vpack.c.bf16 %v2748_v36, %v2747_v41 }
 0x2f3   : > { %4306 = vmatprep.subr.bf16.mxu1 %v4305_v57 }
 0x2f4   : > { %4308 = vmatpush3.bf16.msra.mxu1 %v4305_v57 }
 0x2f7   : > { %4105 = vmatmul.mubr.msk.f32.vlgmr.msra.gmra.mrb[18].mxu1 %vm2753_vm9, %v5694_v13 }
 0x2f8   : > { %4111 = vmatprep.mubr.msk.f32.mxu1 %vm2753_vm9, %v5699_v55 }
 0x329   : > { %v4089_v31 = vpop.f32.mrb[12].mxu1 }
 0x32a   : > { %v5703_v51 = vadd.f32 %v4403_v0, %v4089_v31  ;;  %v2703_v6 = vpop.f32.mrb[13].mxu1 }
 0x32b   : > { %v5705_v29 = vadd.f32 %v4403_v0, %v2703_v6 }
 0x32c   : > { %v2742_v24 = vadd.f32 %v5703_v51, %v5668_v16 }
 0x32d   : > { %v2741_v46 = vadd.f32 %v5705_v29, %v5668_v16 }
 0x32e   : > { %v2750_v56 = vmax.f32 %v2742_v24, 0.0 }
 0x32f   : > { %v2749_v1 = vmax.f32 %v2741_v46, 0.0 }
 0x331   : > { %v4309_v37 = vpack.c.bf16 %v2750_v56, %v2749_v1 }
 0x333   : > { %4310 = vmatprep.subr.bf16.mxu1 %v4309_v37 }
 0x334   : > { %4312 = vmatpush3.bf16.msra.mxu1 %v4309_v37 }
 0x337   : > { %4112 = vmatmul.mubr.msk.f32.vlgmr.msra.gmra.mrb[20].mxu1 %vm2753_vm9, %v5712_v27 }
 0x338   : > { %4176 = vmatprep.mubr.msk.f32.mxu1 %vm2753_vm9, %v4503_v40 }
 0x34d   : > { %v4092_v20 = vpop.f32.mrb[14].mxu1 }
 0x34e   : > { %v5717_v10 = vadd.f32 %v4403_v0, %v4092_v20  ;;  %v2713_v7 = vpop.f32.mrb[15].mxu1 }
 0x34f   : > { %v5719_v33 = vadd.f32 %v4403_v0, %v2713_v7 }
 0x350   : > { %v2744_v15 = vadd.f32 %v5717_v10, %v5668_v16 }
 0x351   : > { %v2743_v2 = vadd.f32 %v5719_v33, %v5668_v16 }
 0x352   : > { %v2752_v63 = vmax.f32 %v2744_v15, 0.0 }
 0x353   : > { %v2751_v47 = vmax.f32 %v2743_v2, 0.0 }
 0x355   : > { %v4313_v21 = vpack.c.bf16 %v2752_v63, %v2751_v47 }
 0x357   : > { %4314 = vmatprep.subr.bf16.mxu0 %v4313_v21 }
 0x358   : > { %4316 = vmatpush3.bf16.msra.mxu0 %v4313_v21 }
 0x359   : > { %4318 = vmatprep.subr.bf16.mxu0 %v5725_v8 }
 0x35b   : > { %4119 = vmatmul.mubr.msk.f32.vlgmr.msra.gmra.mrb[0].mxu0 %vm2753_vm9, %v5731_v12 }
 0x35c   : > { %4320 = vmatpush3.bf16.msra.mxu0 %v5725_v8 }
 0x35d   : > { %4322 = vmatprep.subr.bf16.mxu0 %v5728_v23 }
 0x360   : > { %4324 = vmatpush3.bf16.msra.mxu0 %v5728_v23 }
 0x361   : > { %4326 = vmatprep.subr.bf16.mxu0 %v5737_v30 }
 0x364   : > { %4328 = vmatpush3.bf16.msra.mxu0 %v5737_v30 }
 0x365   : > { %4330 = vmatprep.subr.bf16.mxu0 %v5741_v60 }
 0x368   : > { %4332 = vmatpush3.bf16.msra.mxu0 %v5741_v60 }
 0x369   : > { %4334 = vmatprep.subr.bf16.mxu0 %v5745_v50 }
 0x36c   : > { %4336 = vmatpush3.bf16.msra.mxu0 %v5745_v50 }
 0x36d   : > { %4338 = vmatprep.subr.bf16.mxu0 %v5749_v5 }
 0x370   : > { %4340 = vmatpush3.bf16.msra.mxu0 %v5749_v5 }
 0x371   : > { %4342 = vmatprep.subr.bf16.mxu0 %v5753_v58 }
 0x374   : > { %4344 = vmatpush3.bf16.msra.mxu0 %v5753_v58 }
 0x375   : > { %4346 = vmatprep.subr.bf16.mxu0 %v5757_v53 }
 0x378   : > { %4348 = vmatpush3.bf16.msra.mxu0 %v5757_v53 }
 0x379   : > { %v4099_v3 = vpop.f32.mrb[16].mxu1 }
 0x37a   : > { %v2826_v40 = vpop.f32.mrb[17].mxu1 }
 0x37b   : > { %4153 = vmatprep.mubr.f32.mxu0 %v2826_v40 }
 0x37c   : > { %4154 = vmatmul.mubr.f32.vlgmr.msra.gmra.mrb[2].mxu0 %v4099_v3 }
 0x3ca   : > { %v4106_v0 = vpop.f32.mrb[18].mxu1 }
 0x3cb   : > { %v2907_v28 = vpop.f32.mrb[19].mxu1 }
 0x3cc   : > { %4156 = vmatprep.mubr.f32.mxu0 %v2907_v28 }
 0x3cd   : > { %4157 = vmatmul.mubr.f32.gmra.mrb[4].mxu0 %v4106_v0 }
 0x40a   : > { %v4113_v42 = vpop.f32.mrb[20].mxu1 }
 0x40b   : > { %v2988_v18 = vpop.f32.mrb[21].mxu1 }
 0x40c   : > { %4159 = vmatprep.mubr.f32.mxu0 %v2988_v18 }
 0x40d   : > { %4160 = vmatmul.mubr.f32.gmra.mrb[6].mxu0 %v4113_v42 }
 0x42e   : > { %v4120_v54 = vpop.f32.mrb[0].mxu0 }
 0x42f   : > { %v3069_v36 = vpop.f32.mrb[1].mxu0 }
 0x430   : > { %4162 = vmatprep.mubr.f32.mxu0 %v3069_v36 }
 0x431   : > { %4163 = vmatmul.mubr.f32.gmra.mrb[8].mxu0 %v4120_v54 }
 0x432   : > { %4169 = vmatprep.mubr.msk.f32.mxu0 %vm2753_vm9, %v5655_v19 }
 0x44f   : > { %v4155_v41 = vpop.f32.mrb[2].mxu0 }
 0x450   : > { %v3173_v57 = vadd.f32 %v4155_v41, %v5668_v16  ;;  %v3167_v31 = vpop.f32.mrb[3].mxu0 }
 0x451   : > { %v3168_v6 = vadd.f32 %v5668_v16, %v3167_v31 }
 0x452   : > { %v3207_v24 = vadd.f32 %v5670_v43, %v3173_v57 }
 0x453   : > { %v3206_v46 = vadd.f32 %v5672_v48, %v3168_v6 }
 0x454   : > { %v3215_v56 = vmax.f32 %v3207_v24, 0.0 }
 0x455   : > { %v3214_v1 = vmax.f32 %v3206_v46, 0.0 }
 0x457   : > { %v4349_v37 = vpack.c.bf16 %v3215_v56, %v3214_v1 }
 0x459   : > { %4350 = vmatprep.subr.bf16.mxu0 %v4349_v37 }
 0x45a   : > { %4352 = vmatpush3.bf16.msra.mxu0 %v4349_v37 }
 0x45d   : > { %4170 = vmatmul.mubr.msk.f32.vlgmr.msra.gmra.mrb[10].mxu0 %vm2753_vm9, %v5679_v52 }
 0x45e   : > { %4183 = vmatprep.mubr.msk.f32.mxu0 %vm2753_vm9, %v5699_v55 }
 0x4a0   : > { %v4158_v19 = vpop.f32.mrb[4].mxu0 }
 0x4a1   : > { %v3183_v20 = vadd.f32 %v4158_v19, %v5668_v16  ;;  %v3177_v7 = vpop.f32.mrb[5].mxu0 }
 0x4a2   : > { %v3178_v15 = vadd.f32 %v5668_v16, %v3177_v7 }
 0x4a3   : > { %v3209_v2 = vadd.f32 %v5685_v45, %v3183_v20 }
 0x4a4   : > { %v3208_v63 = vadd.f32 %v5687_v59, %v3178_v15 }
 0x4a5   : > { %v3217_v35 = vmax.f32 %v3209_v2, 0.0 }
 0x4a6   : > { %v3216_v26 = vmax.f32 %v3208_v63, 0.0 }
 0x4a8   : > { %v4353_v47 = vpack.c.bf16 %v3217_v35, %v3216_v26 }
 0x4aa   : > { %4354 = vmatprep.subr.bf16.mxu1 %v4353_v47 }
 0x4ab   : > { %4356 = vmatpush3.bf16.msra.mxu1 %v4353_v47 }
 0x4ae   : > { %4177 = vmatmul.mubr.msk.f32.vlgmr.msra.gmra.mrb[22].mxu1 %vm2753_vm9, %v5694_v13 }
 0x4af   : > { %4190 = vmatprep.mubr.msk.f32.mxu1 %vm2753_vm9, %v5514_v25 }
 0x4e0   : > { %v4161_v52 = vpop.f32.mrb[6].mxu0 }
 0x4e1   : > { %v3193_v55 = vadd.f32 %v4161_v52, %v5668_v16  ;;  %v3187_v21 = vpop.f32.mrb[7].mxu0 }
 0x4e2   : > { %v3188_v49 = vadd.f32 %v5668_v16, %v3187_v21 }
 0x4e3   : > { %v3211_v11 = vadd.f32 %v5703_v51, %v3193_v55 }
 0x4e4   : > { %v3210_v62 = vadd.f32 %v5705_v29, %v3188_v49 }
 0x4e5   : > { %v3219_v61 = vmax.f32 %v3211_v11, 0.0 }
 0x4e6   : > { %v3218_v17 = vmax.f32 %v3210_v62, 0.0 }
 0x4e8   : > { %v4357_v9 = vpack.c.bf16 %v3219_v61, %v3218_v17 }
 0x4ea   : > { %4358 = vmatprep.subr.bf16.mxu0 %v4357_v9 }
 0x4eb   : > { %4360 = vmatpush3.bf16.msra.mxu0 %v4357_v9 }
 0x4ec   : > { %4366 = vmatprep.subr.bf16.mxu0 %v5725_v8 }
 0x4ee   : > { %4184 = vmatmul.mubr.msk.f32.vlgmr.msra.gmra.mrb[12].mxu0 %vm2753_vm9, %v5712_v27 }
 0x4ef   : > { %4368 = vmatpush3.bf16.msra.mxu0 %v5725_v8 }
 0x4f0   : > { %4370 = vmatprep.subr.bf16.mxu0 %v5728_v23 }
 0x4f3   : > { %4372 = vmatpush3.bf16.msra.mxu0 %v5728_v23 }
 0x4f4   : > { %4374 = vmatprep.subr.bf16.mxu0 %v5737_v30 }
 0x4f7   : > { %4376 = vmatpush3.bf16.msra.mxu0 %v5737_v30 }
 0x4f8   : > { %4378 = vmatprep.subr.bf16.mxu0 %v5741_v60 }
 0x4fb   : > { %4380 = vmatpush3.bf16.msra.mxu0 %v5741_v60 }
 0x4fc   : > { %4382 = vmatprep.subr.bf16.mxu0 %v5745_v50 }
 0x4ff   : > { %4384 = vmatpush3.bf16.msra.mxu0 %v5745_v50 }
 0x500   : > { %4386 = vmatprep.subr.bf16.mxu0 %v5749_v5 }
 0x503   : > { %4388 = vmatpush3.bf16.msra.mxu0 %v5749_v5 }
 0x504   : > { %v4164_v25 = vpop.f32.mrb[8].mxu0  ;;  %4390 = vmatprep.subr.bf16.mxu0 %v5753_v58 }
 0x505   : > { %v3203_v13 = vadd.f32 %v4164_v25, %v5668_v16  ;;  %v3197_v27 = vpop.f32.mrb[9].mxu0 }
 0x506   : > { %v3198_v8 = vadd.f32 %v5668_v16, %v3197_v27 }
 0x507   : > { %v3213_v23 = vadd.f32 %v5717_v10, %v3203_v13  ;;  %4392 = vmatpush3.bf16.msra.mxu0 %v5753_v58 }
 0x508   : > { %v3212_v30 = vadd.f32 %v5719_v33, %v3198_v8  ;;  %4394 = vmatprep.subr.bf16.mxu0 %v5757_v53 }
 0x509   : > { %v3221_v60 = vmax.f32 %v3213_v23, 0.0 }
 0x50a   : > { %v3220_v4 = vmax.f32 %v3212_v30, 0.0 }
 0x50b   : > { %4396 = vmatpush3.bf16.msra.mxu0 %v5757_v53 }
 0x50c   : > { %v4361_v22 = vpack.c.bf16 %v3221_v60, %v3220_v4 }
 0x50e   : > { %4362 = vmatprep.subr.bf16.mxu1 %v4361_v22 }
 0x50f   : > { %4364 = vmatpush3.bf16.msra.mxu1 %v4361_v22 }
 0x512   : > { %4191 = vmatmul.mubr.msk.f32.vlgmr.msra.gmra.mrb[24].mxu1 %vm2753_vm9, %v5731_v12 }
 0x530   : > { %v4171_v50 = vpop.f32.mrb[10].mxu0 }
 0x531   : > { %v3288_v34 = vpop.f32.mrb[11].mxu0 }
 0x532   : > { %4225 = vmatprep.mubr.f32.mxu0 %v3288_v34 }
 0x533   : > { %4226 = vmatmul.mubr.f32.vlgmr.msra.gmra.mrb[14].mxu0 %v4171_v50 }
 0x581   : > { %v4178_v14 = vpop.f32.mrb[22].mxu1 }
 0x582   : > { %v3363_v5 = vpop.f32.mrb[23].mxu1 }
 0x583   : > { %4228 = vmatprep.mubr.f32.mxu0 %v3363_v5 }
 0x584   : > { %4229 = vmatmul.mubr.f32.gmra.mrb[16].mxu0 %v4178_v14 }
 0x5c1   : > { %v4185_v32 = vpop.f32.mrb[12].mxu0 }
 0x5c2   : > { %v3438_v44 = vpop.f32.mrb[13].mxu0 }
 0x5c3   : > { %4231 = vmatprep.mubr.f32.mxu0 %v3438_v44 }
 0x5c4   : > { %4232 = vmatmul.mubr.f32.gmra.mrb[18].mxu0 %v4185_v32 }
 0x5e5   : > { %v4192_v58 = vpop.f32.mrb[24].mxu1 }
 0x5e6   : > { %v3513_v38 = vpop.f32.mrb[25].mxu1 }
 0x5e7   : > { %4234 = vmatprep.mubr.f32.mxu0 %v3513_v38 }
 0x5e8   : > { %4235 = vmatmul.mubr.f32.gmra.mrb[20].mxu0 %v4192_v58 }
 0x606   : > { %v4227_v12 = vpop.f32.mrb[14].mxu0 }
 0x607   : > { %v3617_v39 = vadd.f32 %v4227_v12, %v5668_v16  ;;  %v3611_v53 = vpop.f32.mrb[15].mxu0 }
 0x608   : > { %v3612_v3 = vadd.f32 %v5668_v16, %v3611_v53 }
 0x609   : > { %v3651_v40 = vadd.f32 %v5670_v43, %v3617_v39 }
 0x60a   : > { %v3650_v0 = vadd.f32 %v5672_v48, %v3612_v3 }
 0x60b   : > { %v3659_v28 = vmax.f32 %v3651_v40, 0.0 }
 0x60c   : > { %v3658_v42 = vmax.f32 %v3650_v0, 0.0 }
 0x60d   : > { %3667 = vst [vmem:[%s5815_s20 + $0x8] sm:$0xff] %v3659_v28 }
 0x60e   : > { %3666 = vst [vmem:[%s5815_s20] sm:$0xff] %v3658_v42 }
 0x657   : > { %v4230_v18 = vpop.f32.mrb[16].mxu0 }
 0x658   : > { %v3627_v54 = vadd.f32 %v4230_v18, %v5668_v16  ;;  %v3621_v36 = vpop.f32.mrb[17].mxu0 }
 0x659   : > { %v3622_v41 = vadd.f32 %v5668_v16, %v3621_v36 }
 0x65a   : > { %v3653_v43 = vadd.f32 %v5685_v45, %v3627_v54 }
 0x65b   : > { %v3652_v48 = vadd.f32 %v5687_v59, %v3622_v41 }
 0x65c   : > { %v3661_v57 = vmax.f32 %v3653_v43, 0.0 }
 0x65d   : > { %v3660_v31 = vmax.f32 %v3652_v48, 0.0 }
 0x65e   : > { %3669 = vst [vmem:[%s5815_s20 + $0x18] sm:$0xff] %v3661_v57 }
 0x65f   : > { %3668 = vst [vmem:[%s5815_s20 + $0x10] sm:$0xff] %v3660_v31 }
 0x697   : > { %v4233_v6 = vpop.f32.mrb[18].mxu0 }
 0x698   : > { %v3637_v24 = vadd.f32 %v4233_v6, %v5668_v16  ;;  %v3631_v46 = vpop.f32.mrb[19].mxu0 }
 0x699   : > { %v3632_v56 = vadd.f32 %v5668_v16, %v3631_v46 }
 0x69a   : > { %v3655_v1 = vadd.f32 %v5703_v51, %v3637_v24 }
 0x69b   : > { %v3654_v37 = vadd.f32 %v5705_v29, %v3632_v56 }
 0x69c   : > { %v3663_v19 = vmax.f32 %v3655_v1, 0.0 }
 0x69d   : > { %v3662_v45 = vmax.f32 %v3654_v37, 0.0 }
 0x69e   : > { %3671 = vst [vmem:[%s5815_s20 + $0x28] sm:$0xff] %v3663_v19 }
 0x69f   : > { %3670 = vst [vmem:[%s5815_s20 + $0x20] sm:$0xff] %v3662_v45 }
 0x6bb   : > { %v4236_v59 = vpop.f32.mrb[20].mxu0 }
 0x6bc   : > { %v3647_v20 = vadd.f32 %v4236_v59, %v5668_v16  ;;  %v3641_v7 = vpop.f32.mrb[21].mxu0 }
 0x6bd   : > { %v3642_v15 = vadd.f32 %v5668_v16, %v3641_v7 }
 0x6be   : > { %v3657_v2 = vadd.f32 %v5717_v10, %v3647_v20 }
 0x6bf   : > { %v3656_v51 = vadd.f32 %v5719_v33, %v3642_v15 }
 0x6c0   : > { %v3665_v29 = vmax.f32 %v3657_v2, 0.0 }
 0x6c1   : > { %v3664_v63 = vmax.f32 %v3656_v51, 0.0 }
 0x6c2   : > { %3673 = vst [vmem:[%s5815_s20 + $0x38] sm:$0xff] %v3665_v29 }
 0x6c3   : > { %3672 = vst [vmem:[%s5815_s20 + $0x30] sm:$0xff] %v3664_v63 }
 0x6c4   : > { %4605 = shalt.err (!%p4602_p9)
}
 0x6c5   : > { %s4606_s26 = scalar_lea.hbm %s5842_s21, 1024  ;;  %s4610_s17 = scalar_lea.hbm %s5934_s13, 2048 }
 0x6c6   : > { %p4607_p2 = scmp.ne.s32.totalorder %s5842_s21, %s4606_s26  ;;  %p4611_p5 = scmp.lt.u32.totalorder %s5842_s21, %s5934_s13 }
 0x6c7   : > { %p4612_p10 = scmp.lt.u32.totalorder %s4610_s17, %s4606_s26  ;;  %p4614_p12 = scmp.lt.u32.totalorder %s4606_s26, %s5842_s21 }
 0x6c8   : > { %p4608_p0 = pnand %p4607_p2, %p5935_p7 }
 0x6c9   : > { %p4613_p4 = por %p4612_p10, %p4611_p5 }
 0x6ca   : > { %p4609_p3 = pneg %p4608_p0 }
 0x6cb   : > { %p4615_p8 = por %p4614_p12, %p4613_p4 }
 0x6cd   : > { %p4616_p11 = pnand %p4615_p8, %p4609_p3 }
 0x6cf   : > { %4619 = shalt.err (!%p4616_p11)
}
 0x6d0   : > { %s4670_s28 = smov 128   ;;  %s4671_s15 = smov 8  }
 0x6d1   : > { %4433 = dma.vmem_to_hbm [thread:$0]  (%p5935_p7), %s5837_s14, 1024, %s5842_s21, %s5848_s24, %s4670_s28, %s4670_s28, %s4671_s15  }
 0x6d2 PF: > { %s5936_s23 = sld [smem:[#allocation14_spill]]  ;;  %s5937_s25 = sld [smem:[#allocation12_spill]] }
 0x6d3   : > { %s5938_s29 = sld [smem:[#allocation18_spill]] }
 0x6d8   : > { %p4455_p13 = scmp.ge.s32.totalorder %s5936_s23, 2  ;;  %s3704_s16 = sand.u32 1, %s5937_s25  }
 0x6d9   : > { %p5939_p1 = scmp.ne.s32.totalorder %s5938_s29, 0  ;;  %s3705_s19 = scalar_lea.sflag [#allocation4], %s3704_s16 }
 0x6db   : > { %p4446_p6 = pnand %p4455_p13, %p5939_p1 }
 0x6dd   : > { %4645 = dma.done.wait (!%p4446_p6), %s3705_s19, 1024  }
 0x6de   : > { %4647 = vsyncadd (!%p4446_p6), %s3705_s19, 4294966272  ;;  %s5940_s24 = sld [smem:[#allocation15_spill]]  ;;  %s5941_s26 = sld [smem:[#allocation13_spill]] }
 0x6df   : > { %s5942_s23 = sld [smem:[#allocation16_spill]]  ;;  %s5943_s21 = smov %s4654_s22 }
 0x6e4   : > { %p24_p9 = scmp.ge.s32.totalorder %s5940_s24, 4   ;;  %s5944_s22 = smov %s5941_s26 }
 0x6e6   :  { %26 = sbr.rel (!%p24_p9) target bundleno = 7 (0x7), region = 119 }
 0x6ed   :  { %3710 = vsyncpa [#allocation3], 1 }
 0x6ee   :  { %3712 = vsyncpa [#allocation3 + $0x1], 1 }
 0x6ef   :  { %3713 = vsyncpa [#allocation6], 1 }
 0x6f0   :  { %3714 = vsyncpa [#allocation4], 1 }
 0x6f1   :  { %3716 = vsyncpa [#allocation4 + $0x1], 1 }

</bundles_post_ra>
